<compile_context>
chip_gen: v7x
topology: tpu7x:2x2x1
jax: 0.10.0
libtpu: 0.0.40
codegen_flags: <defaults>
</compile_context>

<pallas_src>
import functools
import math

import jax
import jax.numpy as jnp
from jax.experimental import pallas as pl
from jax.experimental.pallas import tpu as pltpu

# ----------------------------- configuration --------------------------------
IMG = 32            # image height/width
PATCH = 16          # patch size (ViT-L/16)
CIN = 3             # input channels
EMB = 32            # hidden dim   (1024 in real ViT-L)
HEADS = 4           # attention heads (16 in real ViT-L)
HDIM = EMB // HEADS
MLP = 64            # mlp dim      (4096 in real ViT-L)
LAYERS = 2          # encoder blocks (24 in real ViT-L)
NPATCH = (IMG // PATCH) ** 2
SEQ = NPATCH + 1    # +1 for class token
CPP = CIN * PATCH * PATCH
LN_EPS = 1e-6       # torchvision ViT uses LayerNorm(eps=1e-6)

_SQRT_HALF = 0.7071067811865476


# ------------------------------- kernels -------------------------------------
def _ln(x, eps):
    """LayerNorm without affine (affine is folded into the next linear)."""
    mu = jnp.mean(x, axis=-1, keepdims=True)
    xc = x - mu
    var = jnp.mean(xc * xc, axis=-1, keepdims=True)
    return xc * jax.lax.rsqrt(var + eps)


def _patch_embed_kernel(p_ref, w_ref, b_ref, cls_ref, pos_ref, o_ref):
    """conv_proj (stride=kernel conv == matmul over flattened patches) + bias
    + patch positional embedding, plus the (cls_token + pos[0]) row, written
    as one lane-dense (SEQ, EMB) block per batch element."""
    patches = p_ref[0].astype(jnp.bfloat16)                    # (NPATCH, CPP)
    acc = jnp.dot(patches, w_ref[...], preferred_element_type=jnp.float32)
    acc = acc + b_ref[...] + pos_ref[...]                      # (NPATCH, EMB)
    full = jnp.concatenate([cls_ref[...], acc], axis=0)        # (SEQ, EMB)
    o_ref[0] = full.astype(o_ref.dtype)


def _encoder_layer_kernel(x_ref, qkv_w, qkv_b, out_w, out_b,
                          w1, b1, w2, b2, o_ref, *, eps):
    """One fused pre-LN transformer encoder block for one batch element.

    LN affine is pre-folded into qkv_w/qkv_b and w1/b1; the 1/sqrt(head_dim)
    attention scale is pre-folded into the q columns of qkv_w/qkv_b.
    MXU operands are bf16, accumulation/LN/softmax/GELU math is f32.
    """
    x = x_ref[0].astype(jnp.float32)                           # (S, E) residual

    # ---- self-attention sub-block: LN1 + QKV projection ----
    y = _ln(x, eps)
    qkv = jnp.dot(y.astype(jnp.bfloat16), qkv_w[...],
                  preferred_element_type=jnp.float32) + qkv_b[...]   # (S, 3E)

    # heads from static column slices of the in-register qkv value
    q = jnp.stack([qkv[:, h * HDIM:(h + 1) * HDIM]
                   for h in range(HEADS)], axis=0)             # (H, S, D)
    k = jnp.stack([qkv[:, EMB + h * HDIM:EMB + (h + 1) * HDIM]
                   for h in range(HEADS)], axis=0)
    v = jnp.stack([qkv[:, 2 * EMB + h * HDIM:2 * EMB + (h + 1) * HDIM]
                   for h in range(HEADS)], axis=0)

    # batched (over heads) QK^T and softmax over the whole (H, S, S) block
    s = jnp.einsum('hqd,hkd->hqk', q.astype(jnp.bfloat16), k.astype(jnp.bfloat16),
                   preferred_element_type=jnp.float32)         # (H, S, S)
    s = s - jnp.max(s, axis=-1, keepdims=True)
    p = jnp.exp(s)
    p = p * pl.reciprocal(jnp.sum(p, axis=-1, keepdims=True), approx=True)
    a = jnp.einsum('hqk,hkd->hqd', p.astype(jnp.bfloat16), v.astype(jnp.bfloat16),
                   preferred_element_type=jnp.float32)         # (H, S, D)
    # merge heads on the last axis -> lane-dense (S, E)
    a = jnp.concatenate([a[h] for h in range(HEADS)], axis=-1)

    # out-projection + residual add
    x = x + jnp.dot(a.astype(jnp.bfloat16), out_w[...],
                    preferred_element_type=jnp.float32) + out_b[...]

    # ---- MLP sub-block: LN2 + MLP1 + erf-GELU + MLP2 + residual ----
    y = _ln(x, eps)
    h1 = jnp.dot(y.astype(jnp.bfloat16), w1[...],
                 preferred_element_type=jnp.float32) + b1[...]        # (S, MLP)
    h1 = 0.5 * h1 * (1.0 + jax.lax.erf(h1 * _SQRT_HALF))              # exact GELU
    x = x + jnp.dot(h1.astype(jnp.bfloat16), w2[...],
                    preferred_element_type=jnp.float32) + b2[...]

    o_ref[0] = x.astype(o_ref.dtype)


def _final_ln_cls_kernel(x_ref, g_ref, b_ref, o_ref, *, eps):
    """Final encoder LayerNorm applied only to the CLS row (the backbone
    returns x[:, 0], so LN over the other tokens is never observed)."""
    cls = x_ref[0].astype(jnp.float32)[:1, :]                  # (1, E)
    y = _ln(cls, eps) * g_ref[...] + b_ref[...]
    o_ref[0] = y.astype(o_ref.dtype)


# ------------------------------ kernel wrappers -------------------------------
def _parallel_params():
    # NOTE: at real ViT-L dims on v7x (64 MiB VMEM) also set vmem_limit_bytes
    # and/or tile MLP K/N; unnecessary at these toy sizes.
    return pltpu.CompilerParams(dimension_semantics=("parallel",))


def patch_embed(patches, w, b, cls_pos, pos):
    """patches: (B, NPATCH, CPP) f32 -> tokens (B, SEQ, EMB) f32 (CLS row 0)."""
    B = patches.shape[0]
    return pl.pallas_call(
        _patch_embed_kernel,
        out_shape=jax.ShapeDtypeStruct((B, SEQ, EMB), jnp.float32),
        grid=(B,),
        in_specs=[pl.BlockSpec((1, NPATCH, CPP), lambda i: (i, 0, 0)),
                  pl.BlockSpec((CPP, EMB), lambda i: (0, 0)),
                  pl.BlockSpec((1, EMB), lambda i: (0, 0)),
                  pl.BlockSpec((1, EMB), lambda i: (0, 0)),
                  pl.BlockSpec((NPATCH, EMB), lambda i: (0, 0))],
        out_specs=pl.BlockSpec((1, SEQ, EMB), lambda i: (i, 0, 0)),
        compiler_params=_parallel_params(),
    )(patches, w, b, cls_pos, pos)


def encoder_layer(x, layer):
    """x: (B, SEQ, EMB) f32 residual stream -> same shape."""
    B = x.shape[0]

    def const(shape):
        return pl.BlockSpec(shape, lambda i: (0, 0))

    return pl.pallas_call(
        functools.partial(_encoder_layer_kernel, eps=LN_EPS),
        out_shape=jax.ShapeDtypeStruct((B, SEQ, EMB), jnp.float32),
        grid=(B,),
        in_specs=[pl.BlockSpec((1, SEQ, EMB), lambda i: (i, 0, 0)),
                  const((EMB, 3 * EMB)), const((1, 3 * EMB)),
                  const((EMB, EMB)),     const((1, EMB)),
                  const((EMB, MLP)),     const((1, MLP)),
                  const((MLP, EMB)),     const((1, EMB))],
        out_specs=pl.BlockSpec((1, SEQ, EMB), lambda i: (i, 0, 0)),
        compiler_params=_parallel_params(),
    )(x, layer["qkv_w"], layer["qkv_b"], layer["out_w"], layer["out_b"],
      layer["mlp_w1"], layer["mlp_b1"], layer["mlp_w2"], layer["mlp_b2"])


def final_layernorm_cls(x, gamma, beta):
    """x: (B, SEQ, EMB) -> CLS features (B, 1, EMB)."""
    B = x.shape[0]
    return pl.pallas_call(
        functools.partial(_final_ln_cls_kernel, eps=LN_EPS),
        out_shape=jax.ShapeDtypeStruct((B, 1, EMB), jnp.float32),
        grid=(B,),
        in_specs=[pl.BlockSpec((1, SEQ, EMB), lambda i: (i, 0, 0)),
                  pl.BlockSpec((1, EMB), lambda i: (0, 0)),
                  pl.BlockSpec((1, EMB), lambda i: (0, 0))],
        out_specs=pl.BlockSpec((1, 1, EMB), lambda i: (i, 0, 0)),
        compiler_params=_parallel_params(),
    )(x, gamma, beta)


# ----------------------------- parameter init --------------------------------
def _fold_ln_into_linear(gamma, beta, w, bias):
    """LayerNorm affine folded into the following linear:
    (norm(x)*g + b) @ W + bias == norm(x) @ (diag(g) W) + (bias + b @ W)."""
    w_f = gamma[:, None] * w
    bias_f = bias + beta @ w
    return w_f, bias_f


def init_params(key):
    keys = jax.random.split(key, 4 + LAYERS * 8)
    ki = iter(keys)

    def nrm(shape, s=0.02):
        return (s * jax.random.normal(next(ki), shape)).astype(jnp.float32)

    scale = 1.0 / math.sqrt(HDIM)

    patch_w = nrm((CPP, EMB))             # conv_proj.weight.reshape(EMB,-1).T
    patch_b = nrm((EMB,))
    class_token = nrm((EMB,))
    pos_embedding = nrm((SEQ, EMB))

    params = {
        "patch_w": patch_w.astype(jnp.bfloat16),
        "patch_b": patch_b.reshape(1, EMB),
        # CLS token with its positional-embedding row folded in (prep time)
        "cls_pos": (class_token + pos_embedding[0]).reshape(1, EMB),
        # positional embedding for the patch tokens, passed once (no broadcast)
        "pos_patch": pos_embedding[1:],
        "ln_final_g": jnp.ones((1, EMB), jnp.float32),
        "ln_final_b": jnp.zeros((1, EMB), jnp.float32),
        "layers": [],
    }

    for _ in range(LAYERS):
        ln1_g = jnp.ones((EMB,), jnp.float32)
        ln1_b = jnp.zeros((EMB,), jnp.float32)
        ln2_g = jnp.ones((EMB,), jnp.float32)
        ln2_b = jnp.zeros((EMB,), jnp.float32)

        qkv_w = nrm((EMB, 3 * EMB))       # in_proj, already transposed (K, 3E)
        qkv_b = nrm((3 * EMB,))
        out_w = nrm((EMB, EMB))
        out_b = nrm((EMB,))
        mlp_w1 = nrm((EMB, MLP))
        mlp_b1 = nrm((MLP,))
        mlp_w2 = nrm((MLP, EMB))
        mlp_b2 = nrm((EMB,))

        # fold LN1 affine into the qkv projection, then fold the
        # 1/sqrt(head_dim) attention scale into the q columns
        qkv_w_f, qkv_b_f = _fold_ln_into_linear(ln1_g, ln1_b, qkv_w, qkv_b)
        qkv_w_f = qkv_w_f.at[:, :EMB].multiply(scale)
        qkv_b_f = qkv_b_f.at[:EMB].multiply(scale)

        # fold LN2 affine into the first MLP linear
        mlp_w1_f, mlp_b1_f = _fold_ln_into_linear(ln2_g, ln2_b, mlp_w1, mlp_b1)

        params["layers"].append({
            "qkv_w": qkv_w_f.astype(jnp.bfloat16),
            "qkv_b": qkv_b_f.reshape(1, 3 * EMB),
            "out_w": out_w.astype(jnp.bfloat16),
            "out_b": out_b.reshape(1, EMB),
            "mlp_w1": mlp_w1_f.astype(jnp.bfloat16),
            "mlp_b1": mlp_b1_f.reshape(1, MLP),
            "mlp_w2": mlp_w2.astype(jnp.bfloat16),
            "mlp_b2": mlp_b2.reshape(1, EMB),
        })
    return params


# ------------------------------ model forward --------------------------------
def vit_large_backbone_forward(x, params):
    """Reproduces VIT_LARGE_backbone.forward: returns CLS-token features (B, EMB)."""
    B = x.shape[0]
    gh = gw = IMG // PATCH
    # im2col for the stride=kernel conv: (B,C,H,W) -> (B, NPATCH, C*P*P)
    patches = x.reshape(B, CIN, gh, PATCH, gw, PATCH)
    patches = jnp.transpose(patches, (0, 2, 4, 1, 3, 5)).reshape(B, NPATCH, CPP)

    # patch projection + bias + pos-embedding + CLS row, fused
    tokens = patch_embed(patches, params["patch_w"], params["patch_b"],
                         params["cls_pos"], params["pos_patch"])      # (B,SEQ,E)

    # one fused pallas_call per encoder block (dropout = identity, eval)
    for layer in params["layers"]:
        tokens = encoder_layer(tokens, layer)

    cls = final_layernorm_cls(tokens, params["ln_final_g"], params["ln_final_b"])
    return cls.reshape(B, EMB)


# ---------------------------------- main --------------------------------------
if __name__ == "__main__":
    key = jax.random.PRNGKey(0)
    k_param, k_input = jax.random.split(key)
    params = init_params(k_param)
    # layout: NCHW, same as the PyTorch module's input
    x = jax.random.normal(k_input, (2, CIN, IMG, IMG), dtype=jnp.float32)

    fwd = jax.jit(vit_large_backbone_forward)
    feats = fwd(x, params)
    feats = jax.block_until_ready(feats)
    assert feats.shape == (2, EMB), feats.shape
    assert bool(jnp.all(jnp.isfinite(feats)))
    print("KERNEL_OK")
</pallas_src>

<mosaic_0001>
module attributes {stable_mosaic.version = 11 : i64} {
  func.func @_patch_embed_kernel(%arg0: i32, %arg1: memref<1x4x768xf32, #tpu.memory_space<vmem>>, %arg2: memref<768x32xbf16, #tpu.memory_space<vmem>>, %arg3: memref<1x32xf32, #tpu.memory_space<vmem>>, %arg4: memref<1x32xf32, #tpu.memory_space<vmem>>, %arg5: memref<4x32xf32, #tpu.memory_space<vmem>>, %arg6: memref<1x5x32xf32, #tpu.memory_space<vmem>>) attributes {dimension_semantics = [#tpu.dimension_semantics<parallel>], iteration_bounds = array<i64: 2>, scalar_prefetch = 0 : i64, scratch_operands = 0 : i64, tpu.core_type = #tpu.core_type<tc>, window_params = [{transform_indices = @transform_0, window_bounds = array<i64: 1, 4, 768>}, {pipeline_mode = #tpu.pipeline_mode<synchronous>, transform_indices = @transform_1, window_bounds = array<i64: 768, 32>}, {pipeline_mode = #tpu.pipeline_mode<synchronous>, transform_indices = @transform_2, window_bounds = array<i64: 1, 32>}, {pipeline_mode = #tpu.pipeline_mode<synchronous>, transform_indices = @transform_3, window_bounds = array<i64: 1, 32>}, {pipeline_mode = #tpu.pipeline_mode<synchronous>, transform_indices = @transform_4, window_bounds = array<i64: 4, 32>}, {transform_indices = @transform_5, window_bounds = array<i64: 1, 5, 32>}]} {
    %c0 = arith.constant 0 : index
    %c0_0 = arith.constant 0 : index
    %c0_1 = arith.constant 0 : index
    %0 = vector.load %arg1[%c0, %c0_0, %c0_1] : memref<1x4x768xf32, #tpu.memory_space<vmem>>, vector<1x4x768xf32>
    %1 = vector.shape_cast %0 : vector<1x4x768xf32> to vector<4x768xf32>
    %2 = arith.truncf %1 : vector<4x768xf32> to vector<4x768xbf16>
    %c0_2 = arith.constant 0 : index
    %c0_3 = arith.constant 0 : index
    %3 = vector.load %arg2[%c0_2, %c0_3] : memref<768x32xbf16, #tpu.memory_space<vmem>>, vector<768x32xbf16>
    %cst = arith.constant dense<0.000000e+00> : vector<4x32xf32>
    %4 = tpu.matmul %2, %3, %cst {dimension_numbers = #tpu.dot_dimension_numbers<[1], [0], [0], [1], [0, 0, 1, 1], [], []>} : vector<4x768xbf16>, vector<768x32xbf16>, vector<4x32xf32> -> vector<4x32xf32>
    %c0_4 = arith.constant 0 : index
    %c0_5 = arith.constant 0 : index
    %5 = vector.load %arg3[%c0_4, %c0_5] : memref<1x32xf32, #tpu.memory_space<vmem>>, vector<1x32xf32>
    %6 = vector.broadcast %5 : vector<1x32xf32> to vector<4x32xf32>
    %7 = arith.addf %4, %6 : vector<4x32xf32>
    %c0_6 = arith.constant 0 : index
    %c0_7 = arith.constant 0 : index
    %8 = vector.load %arg5[%c0_6, %c0_7] : memref<4x32xf32, #tpu.memory_space<vmem>>, vector<4x32xf32>
    %9 = arith.addf %7, %8 : vector<4x32xf32>
    %c0_8 = arith.constant 0 : index
    %c0_9 = arith.constant 0 : index
    %10 = vector.load %arg4[%c0_8, %c0_9] : memref<1x32xf32, #tpu.memory_space<vmem>>, vector<1x32xf32>
    %11 = tpu.concatenate %10, %9 in 0 : vector<1x32xf32>, vector<4x32xf32> -> vector<5x32xf32>
    %c0_10 = arith.constant 0 : index
    %c0_11 = arith.constant 0 : index
    %c0_12 = arith.constant 0 : index
    %12 = vector.load %arg6[%c0_10, %c0_11, %c0_12] : memref<1x5x32xf32, #tpu.memory_space<vmem>>, vector<1x5x32xf32>
    %13 = vector.shape_cast %12 : vector<1x5x32xf32> to vector<5x32xf32>
    %14 = vector.shape_cast %11 : vector<5x32xf32> to vector<1x5x32xf32>
    tpu.vector_store %arg6[%c0_10, %c0_11, %c0_12], %14 {strides = array<i32>} : memref<1x5x32xf32, #tpu.memory_space<vmem>>, vector<1x5x32xf32>,
    return
  }
  func.func @transform_0(%arg0: i32) -> (i32, i32, i32) {
    %c0_i32 = arith.constant 0 : i32
    %c0_i32_0 = arith.constant 0 : i32
    %c0_i32_1 = arith.constant 0 : i32
    return %arg0, %c0_i32, %c0_i32_0 : i32, i32, i32
  }
  func.func @transform_1(%arg0: i32) -> (i32, i32) {
    %c0_i32 = arith.constant 0 : i32
    %c0_i32_0 = arith.constant 0 : i32
    %c0_i32_1 = arith.constant 0 : i32
    return %c0_i32, %c0_i32_0 : i32, i32
  }
  func.func @transform_2(%arg0: i32) -> (i32, i32) {
    %c0_i32 = arith.constant 0 : i32
    %c0_i32_0 = arith.constant 0 : i32
    %c0_i32_1 = arith.constant 0 : i32
    return %c0_i32, %c0_i32_0 : i32, i32
  }
  func.func @transform_3(%arg0: i32) -> (i32, i32) {
    %c0_i32 = arith.constant 0 : i32
    %c0_i32_0 = arith.constant 0 : i32
    %c0_i32_1 = arith.constant 0 : i32
    return %c0_i32, %c0_i32_0 : i32, i32
  }
  func.func @transform_4(%arg0: i32) -> (i32, i32) {
    %c0_i32 = arith.constant 0 : i32
    %c0_i32_0 = arith.constant 0 : i32
    %c0_i32_1 = arith.constant 0 : i32
    return %c0_i32, %c0_i32_0 : i32, i32
  }
  func.func @transform_5(%arg0: i32) -> (i32, i32, i32) {
    %c0_i32 = arith.constant 0 : i32
    %c0_i32_0 = arith.constant 0 : i32
    %c0_i32_1 = arith.constant 0 : i32
    return %arg0, %c0_i32, %c0_i32_0 : i32, i32, i32
  }
}

module attributes {stable_mosaic.version = 11 : i64} {
  func.func @_final_ln_cls_kernel(%arg0: i32, %arg1: memref<1x5x32xf32, #tpu.memory_space<vmem>>, %arg2: memref<1x32xf32, #tpu.memory_space<vmem>>, %arg3: memref<1x32xf32, #tpu.memory_space<vmem>>, %arg4: memref<1x1x32xf32, #tpu.memory_space<vmem>>) attributes {dimension_semantics = [#tpu.dimension_semantics<parallel>], iteration_bounds = array<i64: 2>, scalar_prefetch = 0 : i64, scratch_operands = 0 : i64, tpu.core_type = #tpu.core_type<tc>, window_params = [{transform_indices = @transform_0, window_bounds = array<i64: 1, 5, 32>}, {pipeline_mode = #tpu.pipeline_mode<synchronous>, transform_indices = @transform_1, window_bounds = array<i64: 1, 32>}, {pipeline_mode = #tpu.pipeline_mode<synchronous>, transform_indices = @transform_2, window_bounds = array<i64: 1, 32>}, {transform_indices = @transform_3, window_bounds = array<i64: 1, 1, 32>}]} {
    %c0 = arith.constant 0 : index
    %c0_0 = arith.constant 0 : index
    %c0_1 = arith.constant 0 : index
    %0 = vector.load %arg1[%c0, %c0_0, %c0_1] : memref<1x5x32xf32, #tpu.memory_space<vmem>>, vector<1x5x32xf32>
    %1 = vector.shape_cast %0 : vector<1x5x32xf32> to vector<5x32xf32>
    %2 = vector.extract_strided_slice %1 {offsets = [0, 0], sizes = [1, 32], strides = [1, 1]} : vector<5x32xf32> to vector<1x32xf32>
    %cst = arith.constant dense<0.000000e+00> : vector<1xf32>
    %3 = vector.multi_reduction <add>, %2, %cst [1] : vector<1x32xf32> to vector<1xf32>
    %4 = vector.shape_cast %3 : vector<1xf32> to vector<1x1xf32>
    %cst_2 = arith.constant 3.200000e+01 : f32
    %5 = vector.broadcast %cst_2 : f32 to vector<1x1xf32>
    %6 = arith.divf %4, %5 : vector<1x1xf32>
    %7 = vector.broadcast %6 : vector<1x1xf32> to vector<1x32xf32>
    %8 = arith.subf %2, %7 : vector<1x32xf32>
    %9 = arith.mulf %8, %8 : vector<1x32xf32>
    %cst_3 = arith.constant dense<0.000000e+00> : vector<1xf32>
    %10 = vector.multi_reduction <add>, %9, %cst_3 [1] : vector<1x32xf32> to vector<1xf32>
    %11 = vector.shape_cast %10 : vector<1xf32> to vector<1x1xf32>
    %cst_4 = arith.constant 3.200000e+01 : f32
    %12 = vector.broadcast %cst_4 : f32 to vector<1x1xf32>
    %13 = arith.divf %11, %12 : vector<1x1xf32>
    %cst_5 = arith.constant 9.99999997E-7 : f32
    %14 = vector.broadcast %cst_5 : f32 to vector<1x1xf32>
    %15 = arith.addf %13, %14 : vector<1x1xf32>
    %16 = math.rsqrt %15 : vector<1x1xf32>
    %17 = vector.broadcast %16 : vector<1x1xf32> to vector<1x32xf32>
    %18 = arith.mulf %8, %17 : vector<1x32xf32>
    %c0_6 = arith.constant 0 : index
    %c0_7 = arith.constant 0 : index
    %19 = vector.load %arg2[%c0_6, %c0_7] : memref<1x32xf32, #tpu.memory_space<vmem>>, vector<1x32xf32>
    %20 = arith.mulf %18, %19 : vector<1x32xf32>
    %c0_8 = arith.constant 0 : index
    %c0_9 = arith.constant 0 : index
    %21 = vector.load %arg3[%c0_8, %c0_9] : memref<1x32xf32, #tpu.memory_space<vmem>>, vector<1x32xf32>
    %22 = arith.addf %20, %21 : vector<1x32xf32>
    %c0_10 = arith.constant 0 : index
    %c0_11 = arith.constant 0 : index
    %c0_12 = arith.constant 0 : index
    %23 = vector.load %arg4[%c0_10, %c0_11, %c0_12] : memref<1x1x32xf32, #tpu.memory_space<vmem>>, vector<1x1x32xf32>
    %24 = vector.shape_cast %23 : vector<1x1x32xf32> to vector<1x32xf32>
    %25 = vector.shape_cast %22 : vector<1x32xf32> to vector<1x1x32xf32>
    tpu.vector_store %arg4[%c0_10, %c0_11, %c0_12], %25 {strides = array<i32>} : memref<1x1x32xf32, #tpu.memory_space<vmem>>, vector<1x1x32xf32>,
    return
  }
  func.func @transform_0(%arg0: i32) -> (i32, i32, i32) {
    %c0_i32 = arith.constant 0 : i32
    %c0_i32_0 = arith.constant 0 : i32
    %c0_i32_1 = arith.constant 0 : i32
    return %arg0, %c0_i32, %c0_i32_0 : i32, i32, i32
  }
  func.func @transform_1(%arg0: i32) -> (i32, i32) {
    %c0_i32 = arith.constant 0 : i32
    %c0_i32_0 = arith.constant 0 : i32
    %c0_i32_1 = arith.constant 0 : i32
    return %c0_i32, %c0_i32_0 : i32, i32
  }
  func.func @transform_2(%arg0: i32) -> (i32, i32) {
    %c0_i32 = arith.constant 0 : i32
    %c0_i32_0 = arith.constant 0 : i32
    %c0_i32_1 = arith.constant 0 : i32
    return %c0_i32, %c0_i32_0 : i32, i32
  }
  func.func @transform_3(%arg0: i32) -> (i32, i32, i32) {
    %c0_i32 = arith.constant 0 : i32
    %c0_i32_0 = arith.constant 0 : i32
    %c0_i32_1 = arith.constant 0 : i32
    return %arg0, %c0_i32, %c0_i32_0 : i32, i32, i32
  }
}

module attributes {stable_mosaic.version = 11 : i64} {
  func.func @_encoder_layer_kernel(%arg0: i32, %arg1: memref<1x5x32xf32, #tpu.memory_space<vmem>>, %arg2: memref<32x96xbf16, #tpu.memory_space<vmem>>, %arg3: memref<1x96xf32, #tpu.memory_space<vmem>>, %arg4: memref<32x32xbf16, #tpu.memory_space<vmem>>, %arg5: memref<1x32xf32, #tpu.memory_space<vmem>>, %arg6: memref<32x64xbf16, #tpu.memory_space<vmem>>, %arg7: memref<1x64xf32, #tpu.memory_space<vmem>>, %arg8: memref<64x32xbf16, #tpu.memory_space<vmem>>, %arg9: memref<1x32xf32, #tpu.memory_space<vmem>>, %arg10: memref<1x5x32xf32, #tpu.memory_space<vmem>>) attributes {dimension_semantics = [#tpu.dimension_semantics<parallel>], iteration_bounds = array<i64: 2>, scalar_prefetch = 0 : i64, scratch_operands = 0 : i64, tpu.core_type = #tpu.core_type<tc>, window_params = [{transform_indices = @transform_0, window_bounds = array<i64: 1, 5, 32>}, {pipeline_mode = #tpu.pipeline_mode<synchronous>, transform_indices = @transform_1, window_bounds = array<i64: 32, 96>}, {pipeline_mode = #tpu.pipeline_mode<synchronous>, transform_indices = @transform_2, window_bounds = array<i64: 1, 96>}, {pipeline_mode = #tpu.pipeline_mode<synchronous>, transform_indices = @transform_3, window_bounds = array<i64: 32, 32>}, {pipeline_mode = #tpu.pipeline_mode<synchronous>, transform_indices = @transform_4, window_bounds = array<i64: 1, 32>}, {pipeline_mode = #tpu.pipeline_mode<synchronous>, transform_indices = @transform_5, window_bounds = array<i64: 32, 64>}, {pipeline_mode = #tpu.pipeline_mode<synchronous>, transform_indices = @transform_6, window_bounds = array<i64: 1, 64>}, {pipeline_mode = #tpu.pipeline_mode<synchronous>, transform_indices = @transform_7, window_bounds = array<i64: 64, 32>}, {pipeline_mode = #tpu.pipeline_mode<synchronous>, transform_indices = @transform_8, window_bounds = array<i64: 1, 32>}, {transform_indices = @transform_9, window_bounds = array<i64: 1, 5, 32>}]} {
    %c0 = arith.constant 0 : index
    %c0_0 = arith.constant 0 : index
    %c0_1 = arith.constant 0 : index
    %0 = vector.load %arg1[%c0, %c0_0, %c0_1] : memref<1x5x32xf32, #tpu.memory_space<vmem>>, vector<1x5x32xf32>
    %1 = vector.shape_cast %0 : vector<1x5x32xf32> to vector<5x32xf32>
    %cst = arith.constant dense<0.000000e+00> : vector<5xf32>
    %2 = vector.multi_reduction <add>, %1, %cst [1] : vector<5x32xf32> to vector<5xf32>
    %3 = vector.shape_cast %2 : vector<5xf32> to vector<5x1xf32>
    %cst_2 = arith.constant 3.200000e+01 : f32
    %4 = vector.broadcast %cst_2 : f32 to vector<5x1xf32>
    %5 = arith.divf %3, %4 : vector<5x1xf32>
    %6 = vector.broadcast %5 : vector<5x1xf32> to vector<5x32xf32>
    %7 = arith.subf %1, %6 : vector<5x32xf32>
    %8 = arith.mulf %7, %7 : vector<5x32xf32>
    %cst_3 = arith.constant dense<0.000000e+00> : vector<5xf32>
    %9 = vector.multi_reduction <add>, %8, %cst_3 [1] : vector<5x32xf32> to vector<5xf32>
    %10 = vector.shape_cast %9 : vector<5xf32> to vector<5x1xf32>
    %cst_4 = arith.constant 3.200000e+01 : f32
    %11 = vector.broadcast %cst_4 : f32 to vector<5x1xf32>
    %12 = arith.divf %10, %11 : vector<5x1xf32>
    %cst_5 = arith.constant 9.99999997E-7 : f32
    %13 = vector.broadcast %cst_5 : f32 to vector<5x1xf32>
    %14 = arith.addf %12, %13 : vector<5x1xf32>
    %15 = math.rsqrt %14 : vector<5x1xf32>
    %16 = vector.broadcast %15 : vector<5x1xf32> to vector<5x32xf32>
    %17 = arith.mulf %7, %16 : vector<5x32xf32>
    %18 = arith.truncf %17 : vector<5x32xf32> to vector<5x32xbf16>
    %c0_6 = arith.constant 0 : index
    %c0_7 = arith.constant 0 : index
    %19 = vector.load %arg2[%c0_6, %c0_7] : memref<32x96xbf16, #tpu.memory_space<vmem>>, vector<32x96xbf16>
    %cst_8 = arith.constant dense<0.000000e+00> : vector<5x96xf32>
    %20 = tpu.matmul %18, %19, %cst_8 {dimension_numbers = #tpu.dot_dimension_numbers<[1], [0], [0], [1], [0, 0, 1, 1], [], []>} : vector<5x32xbf16>, vector<32x96xbf16>, vector<5x96xf32> -> vector<5x96xf32>
    %c0_9 = arith.constant 0 : index
    %c0_10 = arith.constant 0 : index
    %21 = vector.load %arg3[%c0_9, %c0_10] : memref<1x96xf32, #tpu.memory_space<vmem>>, vector<1x96xf32>
    %22 = vector.broadcast %21 : vector<1x96xf32> to vector<5x96xf32>
    %23 = arith.addf %20, %22 : vector<5x96xf32>
    %24 = vector.extract_strided_slice %23 {offsets = [0, 0], sizes = [5, 8], strides = [1, 1]} : vector<5x96xf32> to vector<5x8xf32>
    %25 = vector.extract_strided_slice %23 {offsets = [0, 8], sizes = [5, 8], strides = [1, 1]} : vector<5x96xf32> to vector<5x8xf32>
    %26 = vector.extract_strided_slice %23 {offsets = [0, 16], sizes = [5, 8], strides = [1, 1]} : vector<5x96xf32> to vector<5x8xf32>
    %27 = vector.extract_strided_slice %23 {offsets = [0, 24], sizes = [5, 8], strides = [1, 1]} : vector<5x96xf32> to vector<5x8xf32>
    %28 = vector.shape_cast %24 : vector<5x8xf32> to vector<1x5x8xf32>
    %29 = vector.shape_cast %25 : vector<5x8xf32> to vector<1x5x8xf32>
    %30 = vector.shape_cast %26 : vector<5x8xf32> to vector<1x5x8xf32>
    %31 = vector.shape_cast %27 : vector<5x8xf32> to vector<1x5x8xf32>
    %32 = tpu.concatenate %28, %29, %30, %31 in 0 : vector<1x5x8xf32>, vector<1x5x8xf32>, vector<1x5x8xf32>, vector<1x5x8xf32> -> vector<4x5x8xf32>
    %33 = vector.extract_strided_slice %23 {offsets = [0, 32], sizes = [5, 8], strides = [1, 1]} : vector<5x96xf32> to vector<5x8xf32>
    %34 = vector.extract_strided_slice %23 {offsets = [0, 40], sizes = [5, 8], strides = [1, 1]} : vector<5x96xf32> to vector<5x8xf32>
    %35 = vector.extract_strided_slice %23 {offsets = [0, 48], sizes = [5, 8], strides = [1, 1]} : vector<5x96xf32> to vector<5x8xf32>
    %36 = vector.extract_strided_slice %23 {offsets = [0, 56], sizes = [5, 8], strides = [1, 1]} : vector<5x96xf32> to vector<5x8xf32>
    %37 = vector.shape_cast %33 : vector<5x8xf32> to vector<1x5x8xf32>
    %38 = vector.shape_cast %34 : vector<5x8xf32> to vector<1x5x8xf32>
    %39 = vector.shape_cast %35 : vector<5x8xf32> to vector<1x5x8xf32>
    %40 = vector.shape_cast %36 : vector<5x8xf32> to vector<1x5x8xf32>
    %41 = tpu.concatenate %37, %38, %39, %40 in 0 : vector<1x5x8xf32>, vector<1x5x8xf32>, vector<1x5x8xf32>, vector<1x5x8xf32> -> vector<4x5x8xf32>
    %42 = vector.extract_strided_slice %23 {offsets = [0, 64], sizes = [5, 8], strides = [1, 1]} : vector<5x96xf32> to vector<5x8xf32>
    %43 = vector.extract_strided_slice %23 {offsets = [0, 72], sizes = [5, 8], strides = [1, 1]} : vector<5x96xf32> to vector<5x8xf32>
    %44 = vector.extract_strided_slice %23 {offsets = [0, 80], sizes = [5, 8], strides = [1, 1]} : vector<5x96xf32> to vector<5x8xf32>
    %45 = vector.extract_strided_slice %23 {offsets = [0, 88], sizes = [5, 8], strides = [1, 1]} : vector<5x96xf32> to vector<5x8xf32>
    %46 = vector.shape_cast %42 : vector<5x8xf32> to vector<1x5x8xf32>
    %47 = vector.shape_cast %43 : vector<5x8xf32> to vector<1x5x8xf32>
    %48 = vector.shape_cast %44 : vector<5x8xf32> to vector<1x5x8xf32>
    %49 = vector.shape_cast %45 : vector<5x8xf32> to vector<1x5x8xf32>
    %50 = tpu.concatenate %46, %47, %48, %49 in 0 : vector<1x5x8xf32>, vector<1x5x8xf32>, vector<1x5x8xf32>, vector<1x5x8xf32> -> vector<4x5x8xf32>
    %51 = arith.truncf %32 : vector<4x5x8xf32> to vector<4x5x8xbf16>
    %52 = arith.truncf %41 : vector<4x5x8xf32> to vector<4x5x8xbf16>
    "tpu.trace_start"() <{level = 10 : i32, message = "hqd,hkd->hqk"}> : () -> ()
    %cst_11 = arith.constant dense<0.000000e+00> : vector<4x5x5xf32>
    %53 = tpu.matmul %51, %52, %cst_11 {dimension_numbers = #tpu.dot_dimension_numbers<[2], [2], [1], [1], [0, 0, 0, 1, 1, 1], [0], [0]>} : vector<4x5x8xbf16>, vector<4x5x8xbf16>, vector<4x5x5xf32> -> vector<4x5x5xf32>
    "tpu.trace_stop"() : () -> ()
    %cst_12 = arith.constant dense<0xFF800000> : vector<4x5xf32>
    %54 = vector.multi_reduction <maximumf>, %53, %cst_12 [2] : vector<4x5x5xf32> to vector<4x5xf32>
    %55 = vector.shape_cast %54 : vector<4x5xf32> to vector<4x5x1xf32>
    %56 = vector.broadcast %55 : vector<4x5x1xf32> to vector<4x5x5xf32>
    %57 = arith.subf %53, %56 : vector<4x5x5xf32>
    %58 = math.exp %57 : vector<4x5x5xf32>
    %cst_13 = arith.constant dense<0.000000e+00> : vector<4x5xf32>
    %59 = vector.multi_reduction <add>, %58, %cst_13 [2] : vector<4x5x5xf32> to vector<4x5xf32>
    %60 = vector.shape_cast %59 : vector<4x5xf32> to vector<4x5x1xf32>
    %61 = tpu.reciprocal %60 {approx = true} : vector<4x5x1xf32> -> vector<4x5x1xf32>
    %62 = vector.broadcast %61 : vector<4x5x1xf32> to vector<4x5x5xf32>
    %63 = arith.mulf %58, %62 : vector<4x5x5xf32>
    %64 = arith.truncf %63 : vector<4x5x5xf32> to vector<4x5x5xbf16>
    %65 = arith.truncf %50 : vector<4x5x8xf32> to vector<4x5x8xbf16>
    "tpu.trace_start"() <{level = 10 : i32, message = "hqk,hkd->hqd"}> : () -> ()
    %cst_14 = arith.constant dense<0.000000e+00> : vector<4x5x8xf32>
    %66 = tpu.matmul %64, %65, %cst_14 {dimension_numbers = #tpu.dot_dimension_numbers<[2], [1], [1], [2], [0, 0, 0, 1, 1, 2], [0], [0]>} : vector<4x5x5xbf16>, vector<4x5x8xbf16>, vector<4x5x8xf32> -> vector<4x5x8xf32>
    "tpu.trace_stop"() : () -> ()
    %67 = vector.extract_strided_slice %66 {offsets = [0, 0, 0], sizes = [1, 5, 8], strides = [1, 1, 1]} : vector<4x5x8xf32> to vector<1x5x8xf32>
    %68 = vector.shape_cast %67 : vector<1x5x8xf32> to vector<5x8xf32>
    %69 = vector.extract_strided_slice %66 {offsets = [1, 0, 0], sizes = [1, 5, 8], strides = [1, 1, 1]} : vector<4x5x8xf32> to vector<1x5x8xf32>
    %70 = vector.shape_cast %69 : vector<1x5x8xf32> to vector<5x8xf32>
    %71 = vector.extract_strided_slice %66 {offsets = [2, 0, 0], sizes = [1, 5, 8], strides = [1, 1, 1]} : vector<4x5x8xf32> to vector<1x5x8xf32>
    %72 = vector.shape_cast %71 : vector<1x5x8xf32> to vector<5x8xf32>
    %73 = vector.extract_strided_slice %66 {offsets = [3, 0, 0], sizes = [1, 5, 8], strides = [1, 1, 1]} : vector<4x5x8xf32> to vector<1x5x8xf32>
    %74 = vector.shape_cast %73 : vector<1x5x8xf32> to vector<5x8xf32>
    %75 = tpu.concatenate %68, %70, %72, %74 in 1 : vector<5x8xf32>, vector<5x8xf32>, vector<5x8xf32>, vector<5x8xf32> -> vector<5x32xf32>
    %76 = arith.truncf %75 : vector<5x32xf32> to vector<5x32xbf16>
    %c0_15 = arith.constant 0 : index
    %c0_16 = arith.constant 0 : index
    %77 = vector.load %arg4[%c0_15, %c0_16] : memref<32x32xbf16, #tpu.memory_space<vmem>>, vector<32x32xbf16>
    %cst_17 = arith.constant dense<0.000000e+00> : vector<5x32xf32>
    %78 = tpu.matmul %76, %77, %cst_17 {dimension_numbers = #tpu.dot_dimension_numbers<[1], [0], [0], [1], [0, 0, 1, 1], [], []>} : vector<5x32xbf16>, vector<32x32xbf16>, vector<5x32xf32> -> vector<5x32xf32>
    %79 = arith.addf %1, %78 : vector<5x32xf32>
    %c0_18 = arith.constant 0 : index
    %c0_19 = arith.constant 0 : index
    %80 = vector.load %arg5[%c0_18, %c0_19] : memref<1x32xf32, #tpu.memory_space<vmem>>, vector<1x32xf32>
    %81 = vector.broadcast %80 : vector<1x32xf32> to vector<5x32xf32>
    %82 = arith.addf %79, %81 : vector<5x32xf32>
    %cst_20 = arith.constant dense<0.000000e+00> : vector<5xf32>
    %83 = vector.multi_reduction <add>, %82, %cst_20 [1] : vector<5x32xf32> to vector<5xf32>
    %84 = vector.shape_cast %83 : vector<5xf32> to vector<5x1xf32>
    %cst_21 = arith.constant 3.200000e+01 : f32
    %85 = vector.broadcast %cst_21 : f32 to vector<5x1xf32>
    %86 = arith.divf %84, %85 : vector<5x1xf32>
    %87 = vector.broadcast %86 : vector<5x1xf32> to vector<5x32xf32>
    %88 = arith.subf %82, %87 : vector<5x32xf32>
    %89 = arith.mulf %88, %88 : vector<5x32xf32>
    %cst_22 = arith.constant dense<0.000000e+00> : vector<5xf32>
    %90 = vector.multi_reduction <add>, %89, %cst_22 [1] : vector<5x32xf32> to vector<5xf32>
    %91 = vector.shape_cast %90 : vector<5xf32> to vector<5x1xf32>
    %cst_23 = arith.constant 3.200000e+01 : f32
    %92 = vector.broadcast %cst_23 : f32 to vector<5x1xf32>
    %93 = arith.divf %91, %92 : vector<5x1xf32>
    %cst_24 = arith.constant 9.99999997E-7 : f32
    %94 = vector.broadcast %cst_24 : f32 to vector<5x1xf32>
    %95 = arith.addf %93, %94 : vector<5x1xf32>
    %96 = math.rsqrt %95 : vector<5x1xf32>
    %97 = vector.broadcast %96 : vector<5x1xf32> to vector<5x32xf32>
    %98 = arith.mulf %88, %97 : vector<5x32xf32>
    %99 = arith.truncf %98 : vector<5x32xf32> to vector<5x32xbf16>
    %c0_25 = arith.constant 0 : index
    %c0_26 = arith.constant 0 : index
    %100 = vector.load %arg6[%c0_25, %c0_26] : memref<32x64xbf16, #tpu.memory_space<vmem>>, vector<32x64xbf16>
    %cst_27 = arith.constant dense<0.000000e+00> : vector<5x64xf32>
    %101 = tpu.matmul %99, %100, %cst_27 {dimension_numbers = #tpu.dot_dimension_numbers<[1], [0], [0], [1], [0, 0, 1, 1], [], []>} : vector<5x32xbf16>, vector<32x64xbf16>, vector<5x64xf32> -> vector<5x64xf32>
    %c0_28 = arith.constant 0 : index
    %c0_29 = arith.constant 0 : index
    %102 = vector.load %arg7[%c0_28, %c0_29] : memref<1x64xf32, #tpu.memory_space<vmem>>, vector<1x64xf32>
    %103 = vector.broadcast %102 : vector<1x64xf32> to vector<5x64xf32>
    %104 = arith.addf %101, %103 : vector<5x64xf32>
    %cst_30 = arith.constant 5.000000e-01 : f32
    %105 = vector.broadcast %cst_30 : f32 to vector<5x64xf32>
    %106 = arith.mulf %105, %104 : vector<5x64xf32>
    %cst_31 = arith.constant 0.707106769 : f32
    %107 = vector.broadcast %cst_31 : f32 to vector<5x64xf32>
    %108 = arith.mulf %104, %107 : vector<5x64xf32>
    %109 = math.erf %108 : vector<5x64xf32>
    %cst_32 = arith.constant 1.000000e+00 : f32
    %110 = vector.broadcast %cst_32 : f32 to vector<5x64xf32>
    %111 = arith.addf %110, %109 : vector<5x64xf32>
    %112 = arith.mulf %106, %111 : vector<5x64xf32>
    %113 = arith.truncf %112 : vector<5x64xf32> to vector<5x64xbf16>
    %c0_33 = arith.constant 0 : index
    %c0_34 = arith.constant 0 : index
    %114 = vector.load %arg8[%c0_33, %c0_34] : memref<64x32xbf16, #tpu.memory_space<vmem>>, vector<64x32xbf16>
    %cst_35 = arith.constant dense<0.000000e+00> : vector<5x32xf32>
    %115 = tpu.matmul %113, %114, %cst_35 {dimension_numbers = #tpu.dot_dimension_numbers<[1], [0], [0], [1], [0, 0, 1, 1], [], []>} : vector<5x64xbf16>, vector<64x32xbf16>, vector<5x32xf32> -> vector<5x32xf32>
    %116 = arith.addf %82, %115 : vector<5x32xf32>
    %c0_36 = arith.constant 0 : index
    %c0_37 = arith.constant 0 : index
    %117 = vector.load %arg9[%c0_36, %c0_37] : memref<1x32xf32, #tpu.memory_space<vmem>>, vector<1x32xf32>
    %118 = vector.broadcast %117 : vector<1x32xf32> to vector<5x32xf32>
    %119 = arith.addf %116, %118 : vector<5x32xf32>
    %c0_38 = arith.constant 0 : index
    %c0_39 = arith.constant 0 : index
    %c0_40 = arith.constant 0 : index
    %120 = vector.load %arg10[%c0_38, %c0_39, %c0_40] : memref<1x5x32xf32, #tpu.memory_space<vmem>>, vector<1x5x32xf32>
    %121 = vector.shape_cast %120 : vector<1x5x32xf32> to vector<5x32xf32>
    %122 = vector.shape_cast %119 : vector<5x32xf32> to vector<1x5x32xf32>
    tpu.vector_store %arg10[%c0_38, %c0_39, %c0_40], %122 {strides = array<i32>} : memref<1x5x32xf32, #tpu.memory_space<vmem>>, vector<1x5x32xf32>,
    return
  }
  func.func @transform_0(%arg0: i32) -> (i32, i32, i32) {
    %c0_i32 = arith.constant 0 : i32
    %c0_i32_0 = arith.constant 0 : i32
    %c0_i32_1 = arith.constant 0 : i32
    return %arg0, %c0_i32, %c0_i32_0 : i32, i32, i32
  }
  func.func @transform_1(%arg0: i32) -> (i32, i32) {
    %c0_i32 = arith.constant 0 : i32
    %c0_i32_0 = arith.constant 0 : i32
    %c0_i32_1 = arith.constant 0 : i32
    return %c0_i32, %c0_i32_0 : i32, i32
  }
  func.func @transform_2(%arg0: i32) -> (i32, i32) {
    %c0_i32 = arith.constant 0 : i32
    %c0_i32_0 = arith.constant 0 : i32
    %c0_i32_1 = arith.constant 0 : i32
    return %c0_i32, %c0_i32_0 : i32, i32
  }
  func.func @transform_3(%arg0: i32) -> (i32, i32) {
    %c0_i32 = arith.constant 0 : i32
    %c0_i32_0 = arith.constant 0 : i32
    %c0_i32_1 = arith.constant 0 : i32
    return %c0_i32, %c0_i32_0 : i32, i32
  }
  func.func @transform_4(%arg0: i32) -> (i32, i32) {
    %c0_i32 = arith.constant 0 : i32
    %c0_i32_0 = arith.constant 0 : i32
    %c0_i32_1 = arith.constant 0 : i32
    return %c0_i32, %c0_i32_0 : i32, i32
  }
  func.func @transform_5(%arg0: i32) -> (i32, i32) {
    %c0_i32 = arith.constant 0 : i32
    %c0_i32_0 = arith.constant 0 : i32
    %c0_i32_1 = arith.constant 0 : i32
    return %c0_i32, %c0_i32_0 : i32, i32
  }
  func.func @transform_6(%arg0: i32) -> (i32, i32) {
    %c0_i32 = arith.constant 0 : i32
    %c0_i32_0 = arith.constant 0 : i32
    %c0_i32_1 = arith.constant 0 : i32
    return %c0_i32, %c0_i32_0 : i32, i32
  }
  func.func @transform_7(%arg0: i32) -> (i32, i32) {
    %c0_i32 = arith.constant 0 : i32
    %c0_i32_0 = arith.constant 0 : i32
    %c0_i32_1 = arith.constant 0 : i32
    return %c0_i32, %c0_i32_0 : i32, i32
  }
  func.func @transform_8(%arg0: i32) -> (i32, i32) {
    %c0_i32 = arith.constant 0 : i32
    %c0_i32_0 = arith.constant 0 : i32
    %c0_i32_1 = arith.constant 0 : i32
    return %c0_i32, %c0_i32_0 : i32, i32
  }
  func.func @transform_9(%arg0: i32) -> (i32, i32, i32) {
    %c0_i32 = arith.constant 0 : i32
    %c0_i32_0 = arith.constant 0 : i32
    %c0_i32_1 = arith.constant 0 : i32
    return %arg0, %c0_i32, %c0_i32_0 : i32, i32, i32
  }
}

</mosaic_0001>

<bundles_post_ra>
// kernel: vit_large_backbone_forward.7
= control target key start
LH: loop header
LB: loop body
LE: loop exit
PB: predicated region body
PF: predicated region fallthrough
CT: control target
= control target key end

     0   :  { %8 = vsyncpa [#allocation3], 0  ;;  %s497_s0 = inlined_call_operand.vmem [shape: f32[2,5,32], index: 0, kind: input, shape index: {}]   ;;  %s498_s1 = inlined_call_operand.vmem [shape: f32[1,32], index: 1, kind: input, shape index: {}]   ;;  %s499_s2 = inlined_call_operand.vmem [shape: f32[1,32], index: 2, kind: input, shape index: {}]   ;;  %s500_s3 = inlined_call_operand.hbm [shape: f32[2,1,32], index: 3, kind: output, shape index: {}]  }
   0x1   :  { %10 = vsyncpa [#allocation3 + $0x1], 0  ;;  %s388_s12 = smov 0   ;;  %s390_s13 = smov 0  }
   0x2   :  { %s392_s14 = smov 0   ;;  %s394_s15 = smov 0  }
   0x3 LB: > { %s409_s16 = sadd.s32 4294967295, %s365_s15   ;;  %s254_s17 = sadd.s32 4294967294, %s365_s15   ;;  %s365_s15 = sphi %s394_s15, %s506_s15   ;;  %s361_s14 = sphi %s392_s14, %s505_s14   ;;  %s357_s13 = sphi %s390_s13, %s504_s13   ;;  %s353_s12 = sphi %s388_s12, %s503_s12  }
   0x4   : > { %s413_s18 = sadd.s32 1, %s365_s15   ;;  %s91_s19 = sadd.s32 1, %s361_s14 }
   0x5   : > { %s88_s20 = ssub.s32 %s365_s15, %s413_s18  ;;  %p101_p0 = scmp.ne.s32.totalorder %s361_s14, %s357_s13 }
   0x6   : > { %p89_p1 = scmp.eq.s32.totalorder %s88_s20, 0  ;;  %p102_p2 = scmp.eq.s32.totalorder %s409_s16, 1 }
   0x7   : > { %p107_p3 = scmp.ne.s32.totalorder %s357_s13, %s353_s12  ;;  %p108_p4 = scmp.eq.s32.totalorder %s254_s17, 1 }
   0x8   : > { %s424_s21 = scalar_select %p89_p1, %s361_s14, %s91_s19  }
   0x9   : > { %p426_p5 = por %p102_p2, %p101_p0  ;;  %p430_p6 = por %p108_p4, %p107_p3 }
   0xa   : > { %p257_p7 = scmp.ge.s32.totalorder %s365_s15, 1  ;;  %p139_p8 = scmp.lt.s32.totalorder %s365_s15, 3 }
   0xc   : > { %p140_p9 = pnand %p257_p7, %p139_p8 }
   0xd   : > { %p161_p10 = scmp.lt.s32.totalorder (!%p140_p9), %s409_s16, 1  ;;  %vm166_vm0 = vcmask (!%p140_p9), 253952   ;;  %s159_s29 = sand.u32 (!%p140_p9), 1, %s357_s13   ;;  %v181_v11 = vld [vmem:[%s498_s1] sm:$0x1] (!%p140_p9) }
   0xe   : > { %143 = sbr.rel (%p140_p9) target bundleno = 353 (0x161), region = 32  ;;  %v183_v13 = vld [vmem:[%s499_s2] sm:$0x1] (!%p140_p9)  ;;  %s259_s7 = sshll.u32 (!%p140_p9), %s409_s16, 4 }
   0xf   : > { %s160_s8 = scalar_lea.vmem (!%p140_p9), [#allocation2], %s159_s29  ;;  %s454_s17 = scalar_lea.hbm (!%p140_p9), %s500_s3, %s259_s7 }
  0x10   : > { %s199_s9 = sshll.u32 (!%p140_p9), %s160_s8, 4  ;;  %s187_s19 = scalar_lea.sflag (!%p140_p9), [#allocation3], %s159_s29  ;;  %s456_s9 = int_to_ptr.vmem [resolvable:$true] %s199_s9 }
  0x11   : > { %s303_s20 = scalar_lea.vmem (!%p140_p9), %s456_s9, 16 }
  0x12   : > { %p304_p11 = scmp.ne.s32.totalorder (!%p140_p9), %s456_s9, %s303_s20 }
  0x14   : > { %p305_p12 = pnand (!%p140_p9), %p304_p11, %p426_p5 }
  0x15   : > { %s162_s24 = scalar_select %p161_p10, %s409_s16, 1 }
  0x16   : > { %p306_p13 = pneg %p305_p12  ;;  %s367_s16 = smov [#allocation2]  }
  0x17   : > { %s258_s25 = sshll.u32 %s162_s24, 3  ;;  %s307_s24 = sshll.u32 %s367_s16, 4  ;;  %s308_s24 = int_to_ptr.vmem [resolvable:$false] %s307_s24 }
  0x18   : > { %s164_s28 = scalar_lea.vmem %s497_s0, %s258_s25  ;;  %s309_s25 = scalar_lea.vmem %s308_s24, 32 }
  0x19   : > { %v165_v0 = vld [vmem:[%s164_s28] sm:$0x1f]  ;;  %p310_p0 = scmp.lt.s32.totalorder %s456_s9, %s308_s24  ;;  %p311_p1 = scmp.lt.s32.totalorder %s309_s25, %s303_s20 }
  0x1a   : > { %v167_v1 = vsel %vm166_vm0, %v165_v0, 0.0 }
  0x1b   : > { %168 = vadd.xlane.f32.xlu0 %v167_v1  ;;  %p312_p2 = por %p311_p1, %p310_p0 }
  0x1d   : > { %p313_p3 = pnand %p312_p2, %p306_p13 }
  0xa8   : > { %v169_v2 = vpop.xlane.xlu0 %168 }
  0xa9   : > { %v171_v3 = vmul.f32 0.03125, %v169_v2 }
  0xab   : > { %v172_v4 = vsub.f32 %v165_v0, %v171_v3 }
  0xad   : > { %v173_v5 = vmul.f32 %v172_v4, %v172_v4 }
  0xaf   : > { %v174_v6 = vsel %vm166_vm0, %v173_v5, 0.0 }
  0xb0   : > { %175 = vadd.xlane.f32.xlu0 %v174_v6 }
 0x13d   : > { %v176_v7 = vpop.xlane.xlu0 %175 }
 0x13e   : > { %v177_v8 = vmul.f32 0.03125, %v176_v7 }
 0x140   : > { %v178_v9 = vadd.f32 1e-06, %v177_v8 }
 0x142   : > { %301 = vrsqrt.f32 %v178_v9 }
 0x14c   : > { %v302_v10 = vpop.eup %301 }
 0x14d   : > { %v180_v12 = vmul.f32 %v302_v10, %v172_v4 }
 0x14f   : > { %v182_v14 = vmul.f32 %v181_v11, %v180_v12 }
 0x151   : > { %v184_v15 = vadd.f32 %v183_v13, %v182_v14 }
 0x153   : > { %185 = vst.msk [vmem:[%s160_s8] sm:$0x1] %vm166_vm0, %v184_v15 }
 0x154   : > { %316 = shalt.err (!%p313_p3)
}
 0x155   : > { %s317_s26 = scalar_lea.hbm %s454_s17, 16  ;;  %s321_s29 = scalar_lea.hbm %s500_s3, 32 }
 0x156   : > { %p318_p4 = scmp.ne.s32.totalorder %s454_s17, %s317_s26  ;;  %p322_p9 = scmp.lt.u32.totalorder %s454_s17, %s500_s3 }
 0x157   : > { %p323_p10 = scmp.lt.u32.totalorder %s321_s29, %s317_s26  ;;  %p325_p12 = scmp.lt.u32.totalorder %s317_s26, %s454_s17 }
 0x158   : > { %p319_p7 = pnand %p318_p4, %p426_p5 }
 0x159   : > { %p324_p11 = por %p323_p10, %p322_p9 }
 0x15a   : > { %p320_p8 = pneg %p319_p7 }
 0x15b   : > { %p326_p13 = por %p325_p12, %p324_p11 }
 0x15d   : > { %p327_p0 = pnand %p326_p13, %p320_p8 }
 0x15f   : > { %330 = shalt.err (!%p327_p0)
}
 0x160   : > { %262 = dma.vmem_to_hbm [thread:$0]  (%p426_p5), %s456_s9, 16, %s454_s17, %s187_s19  }
 0x161 PF: > { %p268_p1 = scmp.ge.s32.totalorder %s365_s15, 2  ;;  %s211_s5 = sand.u32 1, %s353_s12  }
 0x162   : > { %s212_s6 = scalar_lea.sflag [#allocation3], %s211_s5 }
 0x163   : > { %p265_p2 = pnand %p268_p1, %p430_p6 }
 0x165   : > { %348 = dma.done.wait (!%p265_p2), %s212_s6, 16  }
 0x166   : > { %350 = vsyncadd (!%p265_p2), %s212_s6, 4294967280  ;;  %p13_p3 = scmp.ge.s32.totalorder %s413_s18, 4   ;;  %s503_s12 = smov %s357_s13 }
 0x167   : > { %s504_s13 = smov %s361_s14  ;;  %s505_s14 = smov %s424_s21 }
 0x168   : > { %s506_s15 = smov %s413_s18  ;;  %15 = sbr.rel (!%p13_p3) target bundleno = 3 (0x3), region = 67 }
 0x16f   :  { %216 = vsyncpa [#allocation3], 1 }
 0x170   :  { %218 = vsyncpa [#allocation3 + $0x1], 1 }

// kernel: vit_large_backbone_forward.4
= control target key start
LH: loop header
LB: loop body
LE: loop exit
PB: predicated region body
PF: predicated region fallthrough
CT: control target
= control target key end

     0   :  { %s1038_s18 = smov 0   ;;  %s1221_s0 = inlined_call_operand.vmem [shape: f32[2,4,768], index: 0, kind: input, shape index: {}]   ;;  %s1222_s1 = inlined_call_operand.vmem [shape: bf16[768,32], index: 1, kind: input, shape index: {}]   ;;  %s1223_s2 = inlined_call_operand.vmem [shape: f32[1,32], index: 2, kind: input, shape index: {}]   ;;  %s1224_s3 = inlined_call_operand.vmem [shape: f32[1,32], index: 3, kind: input, shape index: {}]   ;;  %s1225_s4 = inlined_call_operand.vmem [shape: f32[4,32], index: 4, kind: input, shape index: {}]   ;;  %s1226_s5 = inlined_call_operand.vmem [shape: f32[2,5,32], index: 5, kind: output, shape index: {}]  }
   0x1 LB: > { %s816_s19 = sadd.s32 4294967295, %s1006_s18   ;;  %p820_p0 = scmp.ge.s32.totalorder %s1006_s18, 1  ;;  %s1006_s18 = sphi %s1038_s18, %s15_s18  }
   0x2   : > { %p187_p1 = scmp.lt.s32.totalorder %s1006_s18, 3 }
   0x4   : > { %p188_p2 = pnand %p820_p0, %p187_p1 }
   0x5   : > { %v949_v0 = vld [vmem:[%s1222_s1 + $0x40] sm:$0xff] (!%p188_p2)   ;;  %v953_v4 = vld [vmem:[%s1222_s1 + $0x48] sm:$0xff] (!%p188_p2)   ;;  %v957_v8 = vld [vmem:[%s1222_s1 + $0x50] sm:$0xff] (!%p188_p2)   ;;  %p214_p3 = scmp.lt.s32.totalorder (!%p188_p2), %s816_s19, 1  ;;  %vm759_vm0 = vcmask (!%p188_p2), 1040384   ;;  %vm761_vm1 = vcmask (!%p188_p2), 258048  }
   0x6   : > { %191 = sbr.rel (%p188_p2) target bundleno = 293 (0x125), region = 40  ;;  %v950_v1 = vld [vmem:[%s1222_s1] sm:$0xff] (!%p188_p2)   ;;  %874 = vmatprep.subr.bf16.mxu0 (!%p188_p2), %v949_v0  ;;  %v954_v5 = vld [vmem:[%s1222_s1 + $0x8] sm:$0xff] (!%p188_p2)   ;;  %v958_v9 = vld [vmem:[%s1222_s1 + $0x10] sm:$0xff] (!%p188_p2)  }
   0x7   : > { %v951_v2 = vld [vmem:[%s1222_s1 + $0xc0] sm:$0xff] (!%p188_p2)   ;;  %875 = vmatpush3.bf16.msra.mxu0 (!%p188_p2), %v950_v1  ;;  %v955_v6 = vld [vmem:[%s1222_s1 + $0xc8] sm:$0xff] (!%p188_p2)   ;;  %v959_v10 = vld [vmem:[%s1222_s1 + $0xd0] sm:$0xff] (!%p188_p2)  }
   0x8   : > { %v952_v3 = vld [vmem:[%s1222_s1 + $0x80] sm:$0xff] (!%p188_p2)   ;;  %896 = vmatprep.subr.bf16.mxu1 (!%p188_p2), %v951_v2  ;;  %876 = vmatprep.subr.bf16.mxu0 (!%p188_p2), %v953_v4  ;;  %v956_v7 = vld [vmem:[%s1222_s1 + $0x88] sm:$0xff] (!%p188_p2)   ;;  %v960_v11 = vld [vmem:[%s1222_s1 + $0x90] sm:$0xff] (!%p188_p2)  }
   0x9   : > { %897 = vmatpush3.bf16.msra.mxu1 (!%p188_p2), %v952_v3  ;;  %v961_v12 = vld [vmem:[%s1222_s1 + $0x58] sm:$0xff] (!%p188_p2)   ;;  %v965_v16 = vld [vmem:[%s1222_s1 + $0x60] sm:$0xff] (!%p188_p2)   ;;  %v969_v20 = vld [vmem:[%s1222_s1 + $0x68] sm:$0xff] (!%p188_p2)  }
   0xa   : > { %898 = vmatprep.subr.bf16.mxu1 (!%p188_p2), %v955_v6  ;;  %v962_v13 = vld [vmem:[%s1222_s1 + $0x18] sm:$0xff] (!%p188_p2)   ;;  %v966_v17 = vld [vmem:[%s1222_s1 + $0x20] sm:$0xff] (!%p188_p2)   ;;  %v970_v21 = vld [vmem:[%s1222_s1 + $0x28] sm:$0xff] (!%p188_p2)  }
   0xb   : > { %877 = vmatpush3.bf16.msra.mxu0 (!%p188_p2), %v954_v5  ;;  %v963_v14 = vld [vmem:[%s1222_s1 + $0xd8] sm:$0xff] (!%p188_p2)   ;;  %v967_v18 = vld [vmem:[%s1222_s1 + $0xe0] sm:$0xff] (!%p188_p2)   ;;  %v971_v22 = vld [vmem:[%s1222_s1 + $0xe8] sm:$0xff] (!%p188_p2)  }
   0xc   : > { %878 = vmatprep.subr.bf16.mxu0 (!%p188_p2), %v957_v8  ;;  %v964_v15 = vld [vmem:[%s1222_s1 + $0x98] sm:$0xff] (!%p188_p2)   ;;  %v968_v19 = vld [vmem:[%s1222_s1 + $0xa0] sm:$0xff] (!%p188_p2)   ;;  %v972_v23 = vld [vmem:[%s1222_s1 + $0xa8] sm:$0xff] (!%p188_p2)  }
   0xd   : > { %899 = vmatpush3.bf16.msra.mxu1 %v956_v7  ;;  %s1228_s19 = smov (!%p214_p3, %s816_s19), 1  ;;  %v973_v24 = vld [vmem:[%s1222_s1 + $0x70] sm:$0xff]   ;;  %v977_v28 = vld [vmem:[%s1222_s1 + $0x78] sm:$0xff]   ;;  %v982_v35 = vld [vmem:[%s1222_s1 + $0x140] sm:$0xff]  }
   0xe   : > { %900 = vmatprep.subr.bf16.mxu1 %v959_v10  ;;  %s940_s24 = smul.u32 24, %s1228_s19  ;;  %v974_v25 = vld [vmem:[%s1222_s1 + $0x30] sm:$0xff]   ;;  %v978_v29 = vld [vmem:[%s1222_s1 + $0x38] sm:$0xff]   ;;  %v984_v39 = vld [vmem:[%s1222_s1 + $0x100] sm:$0xff]   ;;  %s822_s7 = sshll.u32 %s1228_s19, 3 }
   0xf   : > { %879 = vmatpush3.bf16.msra.mxu0 %v958_v9  ;;  %v975_v26 = vld [vmem:[%s1222_s1 + $0xf0] sm:$0xff]   ;;  %v979_v30 = vld [vmem:[%s1222_s1 + $0xf8] sm:$0xff]   ;;  %v985_v41 = vld [vmem:[%s1222_s1 + $0x148] sm:$0xff]   ;;  %s222_s13 = scalar_lea.vmem %s1226_s5, %s822_s7 }
  0x10   : > { %880 = vmatprep.subr.bf16.mxu0 %v961_v12  ;;  %v976_v27 = vld [vmem:[%s1222_s1 + $0xb0] sm:$0xff]   ;;  %s1143_s10 = scalar_lea.vmem %s1221_s0, %s940_s24  ;;  %v981_v33 = vld [vmem:[%s1222_s1 + $0xb8] sm:$0xff]   ;;  %v986_v43 = vld [vmem:[%s1222_s1 + $0x108] sm:$0xff]  }
  0x11   : > { %901 = vmatpush3.bf16.msra.mxu1 %v960_v11  ;;  %v224_v31 = vld [vmem:[%s1143_s10] sm:$0xff]  ;;  %v225_v36 = vld [vmem:[%s1143_s10 + $0x8] sm:$0xff]  ;;  %v987_v44 = vld [vmem:[%s1222_s1 + $0x150] sm:$0xff]  }
  0x12   : > { %902 = vmatprep.subr.bf16.mxu1 %v963_v14  ;;  %v230_v32 = vcombine.high %v224_v31, %v224_v31  ;;  %v236_v34 = vpack.c.bf16 %v224_v31, %v224_v31  ;;  %v231_v38 = vcombine.high %v225_v36, %v225_v36  ;;  %v238_v40 = vpack.c.bf16 %v225_v36, %v225_v36  ;;  %v988_v45 = vld [vmem:[%s1222_s1 + $0x110] sm:$0xff]   ;;  %v989_v46 = vld [vmem:[%s1222_s1 + $0x158] sm:$0xff]   ;;  %v991_v48 = vld [vmem:[%s1222_s1 + $0x160] sm:$0xff]  }
  0x13   : > { %881 = vmatpush3.bf16.msra.mxu0 %v962_v13  ;;  %v990_v47 = vld [vmem:[%s1222_s1 + $0x118] sm:$0xff]   ;;  %v226_v49 = vld [vmem:[%s1143_s10 + $0x10] sm:$0xff]  ;;  %v992_v51 = vld [vmem:[%s1222_s1 + $0x120] sm:$0xff]  }
  0x14   : > { %882 = vmatprep.subr.bf16.mxu0 %v965_v16  ;;  %v237_v37 = vpack.c.bf16 %v230_v32, %v230_v32  ;;  %v239_v42 = vpack.c.bf16 %v231_v38, %v231_v38  ;;  %v232_v50 = vcombine.high %v226_v49, %v226_v49  ;;  %v993_v52 = vld [vmem:[%s1222_s1 + $0x168] sm:$0xff]   ;;  %v995_v55 = vld [vmem:[%s1222_s1 + $0x170] sm:$0xff]   ;;  %v997_v57 = vld [vmem:[%s1222_s1 + $0x178] sm:$0xff]   ;;  %v240_v59 = vpack.c.bf16 %v226_v49, %v226_v49 }
  0x15   : > { %903 = vmatpush3.bf16.msra.mxu1 %v964_v15  ;;  %v994_v54 = vld [vmem:[%s1222_s1 + $0x128] sm:$0xff]   ;;  %v996_v56 = vld [vmem:[%s1222_s1 + $0x130] sm:$0xff]   ;;  %v998_v58 = vld [vmem:[%s1222_s1 + $0x138] sm:$0xff]  }
  0x16   : > { %904 = vmatprep.subr.bf16.mxu1 %v967_v18  ;;  %665 = vmatprep.mubr.bf16.mxu0 %v237_v37  ;;  %v241_v53 = vpack.c.bf16 %v232_v50, %v232_v50  ;;  %v823_v61 = vld [vmem:[%s1223_s2] ss:$0 sm:$0xff] }
  0x17   : > { %883 = vmatpush3.bf16.msra.mxu0 %v966_v17  ;;  %705 = vmatprep.mubr.bf16.mxu1 %v239_v42  ;;  %v753_v13 = vld [vmem:[%s1225_s4] sm:$0xf] }
  0x18   : > { %884 = vmatprep.subr.bf16.mxu0 %v969_v20  ;;  %v755_v17 = vld [vmem:[%s1224_s3] sm:$0x1] }
  0x19   : > { %905 = vmatpush3.bf16.msra.mxu1 %v968_v19 }
  0x1a   : > { %906 = vmatprep.subr.bf16.mxu1 %v971_v22 }
  0x1b   : > { %885 = vmatpush3.bf16.msra.mxu0 %v970_v21 }
  0x1c   : > { %886 = vmatprep.subr.bf16.mxu0 %v973_v24 }
  0x1d   : > { %907 = vmatpush3.bf16.msra.mxu1 %v972_v23 }
  0x1e   : > { %908 = vmatprep.subr.bf16.mxu1 %v975_v26 }
  0x1f   : > { %887 = vmatpush3.bf16.msra.mxu0 %v974_v25 }
  0x20   : > { %888 = vmatprep.subr.bf16.mxu0 %v977_v28 }
  0x21   : > { %909 = vmatpush3.bf16.msra.mxu1 %v976_v27 }
  0x22   : > { %910 = vmatprep.subr.bf16.mxu1 %v979_v30 }
  0x23   : > { %889 = vmatpush3.bf16.msra.mxu0 %v978_v29 }
  0x24   : > { %918 = vmatprep.subr.bf16.mxu0 %v982_v35 }
  0x25   : > { %911 = vmatpush3.bf16.msra.mxu1 %v981_v33 }
  0x26   : > { %666 = vmatmul.mubr.bf16.vlgmr.msra.gmra.mrb[0].mxu0 %v236_v34 }
  0x27   : > { %919 = vmatpush3.bf16.msra.mxu0 %v984_v39  ;;  %745 = vmatprep.mubr.bf16.mxu0 %v241_v53 }
  0x28   : > { %706 = vmatmul.mubr.bf16.vlgmr.msra.gmra.mrb[0].mxu1 %v238_v40  ;;  %920 = vmatprep.subr.bf16.mxu0 %v985_v41 }
  0x2b   : > { %921 = vmatpush3.bf16.msra.mxu0 %v986_v43 }
  0x2c   : > { %922 = vmatprep.subr.bf16.mxu0 %v987_v44 }
  0x2f   : > { %923 = vmatpush3.bf16.msra.mxu0 %v988_v45 }
  0x30   : > { %924 = vmatprep.subr.bf16.mxu0 %v989_v46 }
  0x33   : > { %925 = vmatpush3.bf16.msra.mxu0 %v990_v47 }
  0x34   : > { %926 = vmatprep.subr.bf16.mxu0 %v991_v48 }
  0x37   : > { %927 = vmatpush3.bf16.msra.mxu0 %v992_v51 }
  0x38   : > { %928 = vmatprep.subr.bf16.mxu0 %v993_v52 }
  0x3b   : > { %929 = vmatpush3.bf16.msra.mxu0 %v994_v54 }
  0x3c   : > { %930 = vmatprep.subr.bf16.mxu0 %v995_v55 }
  0x3f   : > { %931 = vmatpush3.bf16.msra.mxu0 %v996_v56 }
  0x40   : > { %932 = vmatprep.subr.bf16.mxu0 %v997_v57 }
  0x43   : > { %933 = vmatpush3.bf16.msra.mxu0 %v998_v58 }
  0x46   : > { %746 = vmatmul.mubr.bf16.vlgmr.msra.gmra.mrb[4].mxu0 %v240_v59 }
  0xf9   : > { %v890_v60 = vpop.f32.mrb[0].mxu0 }
  0xfa   : > { %v891_v62 = vpop.f32.mrb[1].mxu0 }
  0xfb   : > { %v892_v63 = vadd.f32 %v891_v62, %v890_v60  ;;  %v893_v0 = vpop.f32.mrb[2].mxu0  ;;  %v912_v1 = vpop.f32.mrb[0].mxu1 }
  0xfc   : > { %v894_v2 = vpop.f32.mrb[3].mxu0  ;;  %v913_v3 = vpop.f32.mrb[1].mxu1 }
  0xfd   : > { %v668_v4 = vadd.f32 %v892_v63, %v823_v61  ;;  %v914_v5 = vadd.f32 %v913_v3, %v912_v1  ;;  %v915_v6 = vpop.f32.mrb[2].mxu1 }
  0xfe   : > { %v916_v7 = vpop.f32.mrb[3].mxu1 }
  0xff   : > { %v708_v8 = vadd.f32 %v914_v5, %v668_v4 }
 0x119   : > { %v934_v9 = vpop.f32.mrb[4].mxu0 }
 0x11a   : > { %v935_v10 = vpop.f32.mrb[5].mxu0 }
 0x11b   : > { %v936_v11 = vadd.f32 %v935_v10, %v934_v9  ;;  %v937_v12 = vpop.f32.mrb[6].mxu0 }
 0x11c   : > { %v938_v14 = vpop.f32.mrb[7].mxu0 }
 0x11d   : > { %v748_v15 = vadd.f32 %v936_v11, %v708_v8 }
 0x11f   : > { %v754_v16 = vadd.f32 %v753_v13, %v748_v15 }
 0x121   : > { %v757_v18 = vrot.slane %v754_v16, 7 }
 0x123   : > { %v760_v19 = vsel %vm759_vm0, %v755_v17, %v757_v18 }
 0x124   : > { %762 = vst.msk [vmem:[%s222_s13] sm:$0x1f] %vm761_vm1, %v760_v19 }
 0x125 PF: > { %s15_s18 = sadd.s32 1, %s1006_s18  }
 0x126   : > { %p12_p4 = scmp.ge.s32.totalorder %s15_s18, 4  }
 0x128   :  { %14 = sbr.rel (!%p12_p4) target bundleno = 1 (0x1), region = 70 }

// kernel: vit_large_backbone_forward.5
= control target key start
LH: loop header
LB: loop body
LE: loop exit
PB: predicated region body
PF: predicated region fallthrough
CT: control target
= control target key end

     0   :  { %s1450_s30 = smov 0   ;;  %s1611_s0 = inlined_call_operand.vmem [shape: f32[2,5,32], index: 0, kind: input, shape index: {}]   ;;  %s1612_s1 = inlined_call_operand.vmem [shape: bf16[32,96], index: 1, kind: input, shape index: {}]   ;;  %s1613_s2 = inlined_call_operand.vmem [shape: f32[1,96], index: 2, kind: input, shape index: {}]   ;;  %s1614_s3 = inlined_call_operand.vmem [shape: bf16[32,32], index: 3, kind: input, shape index: {}]   ;;  %s1615_s4 = inlined_call_operand.vmem [shape: f32[1,32], index: 4, kind: input, shape index: {}]   ;;  %s1616_s5 = inlined_call_operand.vmem [shape: bf16[32,64], index: 5, kind: input, shape index: {}]   ;;  %s1617_s6 = inlined_call_operand.vmem [shape: f32[1,64], index: 6, kind: input, shape index: {}]   ;;  %s1618_s7 = inlined_call_operand.vmem [shape: bf16[64,32], index: 7, kind: input, shape index: {}]   ;;  %s1619_s8 = inlined_call_operand.vmem [shape: f32[1,32], index: 8, kind: input, shape index: {}]   ;;  %s1620_s9 = inlined_call_operand.vmem [shape: f32[2,5,32], index: 9, kind: output, shape index: {}]  }
   0x1 LB: > { %s1181_s10 = sadd.s32 4294967295, %s1387_s30   ;;  %p1185_p0 = scmp.ge.s32.totalorder %s1387_s30, 1  ;;  %s1387_s30 = sphi %s1450_s30, %s19_s30  }
   0x2   : > { %p286_p1 = scmp.lt.s32.totalorder %s1387_s30, 3 }
   0x4   : > { %p287_p2 = pnand %p1185_p0, %p286_p1 }
   0x5   : > { %p320_p3 = scmp.lt.s32.totalorder (!%p287_p2), %s1181_s10, 1  ;;  %vm330_vm0 = vcmask (!%p287_p2), 258048   ;;  %v1349_v7 = vld [vmem:[%s1612_s1] sm:$0xff] (!%p287_p2)   ;;  %v1389_v8 = vmov (!%p287_p2), 0.0   ;;  %vm1390_vm1 = vmmov (!%p287_p2), 0   ;;  %v1350_v9 = vld [vmem:[%s1612_s1 + $0x8] sm:$0xff] (!%p287_p2)  }
   0x6   : > { %290 = sbr.rel (%p287_p2) target bundleno = 2627 (0xa43), region = 56  ;;  %1246 = vmatprep.subr.bf16.mxu0 (!%p287_p2), %v1389_v8  ;;  %1250 = vmatprep.mubr.msk.bf16.mxu0 (!%p287_p2), %vm1390_vm1, %v1389_v8  ;;  %vm369_vm2 = vcmask (!%p287_p2), 261120   ;;  %v1188_v16 = vld [vmem:[%s1613_s2] ss:$0 sm:$0xff] (!%p287_p2)  ;;  %s1391_s21 = smov (!%p287_p2), 104   ;;  %vm430_vm3 = vcmask (!%p287_p2), 64512  }
   0x7   : > { %1247 = vmatpush3.bf16.msra.mxu0 (!%p287_p2), %v1349_v7  ;;  %1254 = vmatprep.subr.bf16.mxu1 (!%p287_p2), %v1389_v8  ;;  %s1392_s22 = smov (!%p287_p2), 120   ;;  %s1393_s23 = smov (!%p287_p2), 112   ;;  %vm624_vm4 = vcmask (!%p287_p2), 36864   ;;  %vm679_vm5 = vcmask (!%p287_p2), 1041408   ;;  %vm680_vm6 = vcmask (!%p287_p2), 1042432   ;;  %vm675_vm7 = vcmask (!%p287_p2), 39936  }
   0x8   : > { %1248 = vmatprep.subr.bf16.mxu0 (!%p287_p2), %v1389_v8  ;;  %1256 = vmatprep.mubr.msk.bf16.mxu1 (!%p287_p2), %vm1390_vm1, %v1389_v8  ;;  %s1394_s24 = smov (!%p287_p2), 96   ;;  %s1395_s25 = smov (!%p287_p2), 64   ;;  %vm883_vm8 = vcmask (!%p287_p2), 130048   ;;  %vm885_vm9 = vcmask (!%p287_p2), 195584   ;;  %vm1074_vm10 = vcmask (!%p287_p2), 523264  }
   0x9   : > { %s1397_s12 = smov (!%p287_p2), 8   ;;  %s1398_s13 = smov (!%p287_p2), 16  }
   0xb   : > { %1249 = vmatpush3.bf16.msra.mxu0 (!%p287_p2), %v1350_v9 }
   0xc   : > { %1260 = vmatprep.subr.bf16.mxu0 (!%p287_p2), %v1389_v8 }
   0xd   : > { %s1622_s10 = smov (!%p320_p3, %s1181_s10), 1 }
   0xe   : > { %s1186_s11 = sshll.u32 %s1622_s10, 3 }
   0xf   : > { %s323_s14 = scalar_lea.vmem %s1611_s0, %s1186_s11  ;;  %s327_s17 = scalar_lea.vmem %s1620_s9, %s1186_s11 }
  0x10   : > { %v1466_v0 = vld [vmem:[%s323_s14] sm:$0x1f]  ;;  %s1399_s14 = smov 24  }
  0x11   : > { %v331_v1 = vsel %vm330_vm0, %v1466_v0, 0.0 }
  0x12   : > { %332 = vadd.xlane.f32.xlu0 %v331_v1 }
  0x9f   : > { %v333_v2 = vpop.xlane.xlu0 %332 }
  0xa0   : > { %v335_v3 = vmul.f32 0.03125, %v333_v2  ;;  %v1396_v2 = vmov 65535  }
  0xa2   : > { %v336_v4 = vsub.f32 %v1466_v0, %v335_v3  ;;  %v681_v3 = vsel %vm679_vm5, 4294967295, %v1396_v2 }
  0xa4   : > { %v337_v5 = vmul.f32 %v336_v4, %v336_v4 }
  0xa6   : > { %v338_v6 = vsel %vm330_vm0, %v337_v5, 0.0 }
  0xa7   : > { %339 = vadd.xlane.f32.xlu0 %v338_v6  ;;  %v682_v6 = vsel %vm680_vm6, %v681_v3, 0 }
 0x134   : > { %v340_v10 = vpop.xlane.xlu0 %339 }
 0x135   : > { %v341_v11 = vmul.f32 0.03125, %v340_v10 }
 0x137   : > { %v342_v12 = vadd.f32 1e-06, %v341_v11 }
 0x139   : > { %1359 = vrsqrt.f32 %v342_v12 }
 0x143   : > { %v1360_v13 = vpop.eup %1359 }
 0x144   : > { %v344_v14 = vmul.f32 %v1360_v13, %v336_v4 }
 0x146   : > { %v345_v15 = vpack.c.bf16 %v344_v14, %v344_v14 }
 0x148   : > { %1251 = vmatmul.mubr.msk.bf16.vlgmr.msra.gmra.mrb[0].mxu0 %vm369_vm2, %v345_v15 }
 0x149   : > { %1262 = vmatprep.mubr.msk.bf16.mxu0 %vm1390_vm1, %v1389_v8 }
 0x21b   : > { %v407_v17 = vpop.f32.mrb[0].mxu0 }
 0x21c   : > { %v408_v18 = vadd.f32 %v1188_v16, %v407_v17  ;;  %v1252_v19 = vpop.f32.mrb[1].mxu0 }
 0x21d   : > { %v410_v20 = vpop.f32.mrb[2].mxu0 }
 0x21e   : > { %420 = vrot.lane.b32.xlu0 %v408_v18, %s1391_s21  ;;  %414 = vrot.lane.b32.xlu1 %v408_v18, %s1392_s22  ;;  %v1253_v21 = vpop.f32.mrb[3].mxu0  ;;  %v423_v22 = vpack.c.bf16 %v408_v18, %v408_v18 }
 0x222   : > { %417 = vrot.lane.b32.xlu1 %v408_v18, %s1393_s23 }
 0x226   : > { %428 = vrot.lane.b32.xlu1 %v423_v22, %s1394_s24 }
 0x290   : > { %v415_v23 = vpop.permute.xlu1 %414  ;;  %v421_v27 = vpop.permute.xlu0 %420 }
 0x291   : > { %v1492_v24 = vpack.c.bf16 %v415_v23, %v415_v23  ;;  %v1498_v29 = vpack.c.bf16 %v421_v27, %v421_v27 }
 0x293   : > { %478 = vrot.lane.b32.xlu1 %v1492_v24, %s1394_s24 }
 0x294   : > { %v418_v25 = vpop.permute.xlu1 %417 }
 0x295   : > { %v1495_v26 = vpack.c.bf16 %v418_v25, %v418_v25 }
 0x297   : > { %527 = vrot.lane.b32.xlu1 %v1495_v26, %s1394_s24 }
 0x298   : > { %v429_v28 = vpop.permute.xlu1 %428 }
 0x299   : > { %v435_v30 = vsel %vm430_vm3, %v429_v28, 0 }
 0x29a   : > { %1255 = vmatpush3.bf16.xpose.msra.mxu1 %v435_v30 }
 0x29b   : > { %576 = vrot.lane.b32.xlu1 %v1498_v29, %s1394_s24  ;;  %1266 = vmatprep.subr.bf16.mxu1 %v1389_v8 }
 0x2a1   : > { %1257 = vmatmul.mubr.msk.bf16.vlgmr.msra.gmra.mrb[0].mxu1 %vm430_vm3, %v423_v22 }
 0x2a2   : > { %1268 = vmatprep.mubr.msk.bf16.mxu1 %vm1390_vm1, %v1389_v8 }
 0x305   : > { %v479_v31 = vpop.permute.xlu1 %478 }
 0x306   : > { %v484_v32 = vsel %vm430_vm3, %v479_v31, 0 }
 0x307   : > { %1261 = vmatpush3.bf16.xpose.msra.mxu0 %v484_v32 }
 0x308   : > { %1272 = vmatprep.subr.bf16.mxu0 %v1389_v8 }
 0x309   : > { %v528_v33 = vpop.permute.xlu1 %527 }
 0x30a   : > { %v533_v34 = vsel %vm430_vm3, %v528_v33, 0 }
 0x30b   : > { %1267 = vmatpush3.bf16.xpose.msra.mxu1 %v533_v34 }
 0x30c   : > { %1278 = vmatprep.subr.bf16.mxu1 %v1389_v8 }
 0x30d   : > { %v577_v35 = vpop.permute.xlu1 %576 }
 0x30e   : > { %v582_v36 = vsel %vm430_vm3, %v577_v35, 0  ;;  %1263 = vmatmul.mubr.msk.bf16.vlgmr.msra.gmra.mrb[4].mxu0 %vm430_vm3, %v1492_v24 }
 0x30f   : > { %1273 = vmatpush3.bf16.xpose.msra.mxu0 %v582_v36  ;;  %1274 = vmatprep.mubr.msk.bf16.mxu0 %vm1390_vm1, %v1389_v8 }
 0x310   : > { %1284 = vmatprep.subr.bf16.mxu0 %v1389_v8 }
 0x312   : > { %1269 = vmatmul.mubr.msk.bf16.vlgmr.msra.gmra.mrb[4].mxu1 %vm430_vm3, %v1495_v26 }
 0x313   : > { %1280 = vmatprep.mubr.msk.bf16.mxu1 %vm1390_vm1, %v1389_v8 }
 0x316   : > { %1275 = vmatmul.mubr.msk.bf16.vlgmr.msra.gmra.mrb[8].mxu0 %vm430_vm3, %v1498_v29 }
 0x317   : > { %1286 = vmatprep.mubr.msk.bf16.mxu0 %vm1390_vm1, %v1389_v8 }
 0x374   : > { %v471_v37 = vpop.f32.mrb[0].mxu1 }
 0x375   : > { %v1258_v38 = vpop.f32.mrb[1].mxu1  ;;  %v625_v39 = vsel %vm624_vm4, %v471_v37, -inf }
 0x376   : > { %626 = vmax.xlane.f32.xlu1 %v625_v39  ;;  %v474_v40 = vpop.f32.mrb[2].mxu1 }
 0x377   : > { %v1259_v41 = vpop.f32.mrb[3].mxu1 }
 0x3e1   : > { %v520_v42 = vpop.f32.mrb[4].mxu0 }
 0x3e2   : > { %v1264_v43 = vpop.f32.mrb[5].mxu0  ;;  %v628_v44 = vsel %vm624_vm4, %v520_v42, -inf }
 0x3e3   : > { %629 = vmax.xlane.f32.xlu0 %v628_v44  ;;  %v523_v45 = vpop.f32.mrb[6].mxu0 }
 0x3e4   : > { %v1265_v46 = vpop.f32.mrb[7].mxu0 }
 0x3e5   : > { %v569_v47 = vpop.f32.mrb[4].mxu1  ;;  %v1351_v46 = vld [vmem:[%s1614_s3] sm:$0xff]  }
 0x3e6   : > { %v1270_v48 = vpop.f32.mrb[5].mxu1  ;;  %v631_v49 = vsel %vm624_vm4, %v569_v47, -inf }
 0x3e7   : > { %632 = vmax.xlane.f32.xlu1 %v631_v49  ;;  %v572_v50 = vpop.f32.mrb[6].mxu1 }
 0x3e8   : > { %v1271_v51 = vpop.f32.mrb[7].mxu1 }
 0x3e9   : > { %v618_v52 = vpop.f32.mrb[8].mxu0 }
 0x3ea   : > { %v1276_v53 = vpop.f32.mrb[9].mxu0  ;;  %v634_v54 = vsel %vm624_vm4, %v618_v52, -inf }
 0x3eb   : > { %635 = vmax.xlane.f32.xlu0 %v634_v54  ;;  %v621_v55 = vpop.f32.mrb[10].mxu0 }
 0x3ec   : > { %v1277_v56 = vpop.f32.mrb[11].mxu0 }
 0x3f8   : > { %673 = vrot.lane.b32.xlu1 %v423_v22, %s1395_s25 }
 0x403   : > { %v627_v57 = vpop.xlane.xlu1 %626 }
 0x404   : > { %v637_v58 = vsub.f32 %v471_v37, %v627_v57 }
 0x406   : > { %v641_v59 = vmul.f32 1.442695, %v637_v58 }
 0x408   : > { %1361 = vpow2.f32 %v641_v59 }
 0x412   : > { %v1362_v60 = vpop.eup %1361 }
 0x413   : > { %v649_v61 = vsel %vm624_vm4, %v1362_v60, 0.0 }
 0x41c   : > { %650 = vadd.xlane.f32.xlu1 %v649_v61 }
 0x470   : > { %v630_v62 = vpop.xlane.xlu0 %629 }
 0x471   : > { %v638_v63 = vsub.f32 %v520_v42, %v630_v62 }
 0x473   : > { %v643_v1 = vmul.f32 1.442695, %v638_v63 }
 0x474   : > { %v633_v4 = vpop.xlane.xlu1 %632 }
 0x475   : > { %1363 = vpow2.f32 %v643_v1  ;;  %v639_v5 = vsub.f32 %v569_v47, %v633_v4  ;;  %v1352_v47 = vld [vmem:[%s1614_s3 + $0x8] sm:$0xff]  }
 0x477   : > { %v645_v7 = vmul.f32 1.442695, %v639_v5  ;;  %v1203_v5 = vld [vmem:[%s1615_s4] ss:$0 sm:$0xff] }
 0x478   : > { %v674_v9 = vpop.permute.xlu1 %673  ;;  %v636_v10 = vpop.xlane.xlu0 %635 }
 0x479   : > { %1365 = vpow2.f32 %v645_v7  ;;  %v684_v11 = vand.u32 %v682_v6, %v674_v9  ;;  %v640_v12 = vsub.f32 %v618_v52, %v636_v10 }
 0x47b   : > { %v647_v13 = vmul.f32 1.442695, %v640_v12  ;;  %1279 = vmatpush3.bf16.msra.mxu1 %v684_v11 }
 0x47c   : > { %1290 = vmatprep.subr.bf16.mxu1 %v1389_v8 }
 0x47d   : > { %1367 = vpow2.f32 %v647_v13 }
 0x47f   : > { %v1364_v14 = vpop.eup %1363 }
 0x480   : > { %v652_v15 = vsel %vm624_vm4, %v1364_v14, 0.0 }
 0x481   : > { %653 = vadd.xlane.f32.xlu0 %v652_v15 }
 0x483   : > { %v1366_v16 = vpop.eup %1365 }
 0x484   : > { %v655_v17 = vsel %vm624_vm4, %v1366_v16, 0.0 }
 0x485   : > { %656 = vadd.xlane.f32.xlu1 %v655_v17 }
 0x487   : > { %v1368_v18 = vpop.eup %1367 }
 0x488   : > { %v658_v19 = vsel %vm624_vm4, %v1368_v18, 0.0 }
 0x489   : > { %659 = vadd.xlane.f32.xlu0 %v658_v19 }
 0x496   : > { %774 = vrot.lane.b32.xlu1 %v1495_v26, %s1395_s25 }
 0x49a   : > { %822 = vrot.lane.b32.xlu1 %v1498_v29, %s1395_s25 }
 0x49f   : > { %726 = vrot.lane.b32.xlu0 %v1492_v24, %s1395_s25 }
 0x4a9   : > { %v651_v20 = vpop.xlane.xlu1 %650 }
 0x4aa   : > { %1369 = vrcp.f32 %v651_v20 }
 0x4b4   : > { %v1370_v21 = vpop.eup %1369 }
 0x4b5   : > { %v665_v22 = vmul.f32 %v1370_v21, %v1362_v60 }
 0x4b7   : > { %v669_v23 = vpack.c.bf16 %v665_v22, %v665_v22 }
 0x4b9   : > { %1281 = vmatmul.mubr.msk.bf16.vlgmr.msra.gmra.mrb[8].mxu1 %vm675_vm7, %v669_v23 }
 0x4ba   : > { %1292 = vmatprep.mubr.msk.bf16.mxu1 %vm1390_vm1, %v1389_v8 }
 0x50e   : > { %v654_v25 = vpop.xlane.xlu0 %653 }
 0x50f   : > { %1371 = vrcp.f32 %v654_v25 }
 0x512   : > { %v657_v26 = vpop.xlane.xlu1 %656 }
 0x513   : > { %1373 = vrcp.f32 %v657_v26  ;;  %v1355_v26 = vld [vmem:[%s1618_s7] sm:$0xff]  }
 0x516   : > { %v775_v27 = vpop.permute.xlu1 %774  ;;  %v660_v28 = vpop.xlane.xlu0 %659 }
 0x517   : > { %v780_v29 = vand.u32 %v775_v27, %v682_v6  ;;  %1375 = vrcp.f32 %v660_v28  ;;  %v1356_v27 = vld [vmem:[%s1618_s7 + $0x8] sm:$0xff]   ;;  %v1357_v28 = vld [vmem:[%s1618_s7 + $0x10] sm:$0xff]  }
 0x519   : > { %v1372_v24 = vpop.eup %1371  ;;  %1291 = vmatpush3.bf16.msra.mxu1 %v780_v29  ;;  %v1358_v29 = vld [vmem:[%s1618_s7 + $0x18] sm:$0xff]  }
 0x51a   : > { %v666_v30 = vmul.f32 %v1372_v24, %v1364_v14  ;;  %v727_v31 = vpop.permute.xlu0 %726  ;;  %1302 = vmatprep.subr.bf16.mxu1 %v1389_v8  ;;  %v823_v33 = vpop.permute.xlu1 %822  ;;  %v1204_v24 = vld [vmem:[%s1617_s6] ss:$0 sm:$0xff] }
 0x51b   : > { %v732_v32 = vand.u32 %v727_v31, %v682_v6  ;;  %v828_v37 = vand.u32 %v823_v33, %v682_v6 }
 0x51c   : > { %v670_v36 = vpack.c.bf16 %v666_v30, %v666_v30 }
 0x51d   : > { %v1374_v34 = vpop.eup %1373  ;;  %1285 = vmatpush3.bf16.msra.mxu0 %v732_v32 }
 0x51e   : > { %v667_v35 = vmul.f32 %v1374_v34, %v1366_v16  ;;  %1296 = vmatprep.subr.bf16.mxu0 %v1389_v8 }
 0x520   : > { %1287 = vmatmul.mubr.msk.bf16.vlgmr.msra.gmra.mrb[12].mxu0 %vm675_vm7, %v670_v36  ;;  %v671_v38 = vpack.c.bf16 %v667_v35, %v667_v35 }
 0x521   : > { %v1376_v39 = vpop.eup %1375  ;;  %1297 = vmatpush3.bf16.msra.mxu0 %v828_v37  ;;  %1298 = vmatprep.mubr.msk.bf16.mxu0 %vm1390_vm1, %v1389_v8 }
 0x522   : > { %v668_v40 = vmul.f32 %v1376_v39, %v1368_v18  ;;  %1293 = vmatmul.mubr.msk.bf16.vlgmr.msra.gmra.mrb[12].mxu1 %vm675_vm7, %v671_v38  ;;  %1310 = vmatprep.subr.bf16.mxu0 %v1389_v8  ;;  %v1353_v18 = vld [vmem:[%s1616_s5] sm:$0xff]  }
 0x523   : > { %1306 = vmatprep.mubr.msk.bf16.mxu1 %vm1390_vm1, %v1389_v8  ;;  %1303 = vmatpush3.bf16.msra.mxu1 %v1351_v46 }
 0x524   : > { %v672_v41 = vpack.c.bf16 %v668_v40, %v668_v40  ;;  %1304 = vmatprep.subr.bf16.mxu1 %v1389_v8 }
 0x527   : > { %1305 = vmatpush3.bf16.msra.mxu1 %v1352_v47 }
 0x528   : > { %1299 = vmatmul.mubr.msk.bf16.vlgmr.msra.gmra.mrb[16].mxu0 %vm675_vm7, %v672_v41  ;;  %1318 = vmatprep.subr.bf16.mxu1 %v1389_v8  ;;  %v1213_v41 = vld [vmem:[%s1619_s8] ss:$0 sm:$0xff] }
 0x529   : > { %1314 = vmatprep.mubr.msk.bf16.mxu0 %vm1390_vm1, %v1389_v8  ;;  %1311 = vmatpush3.bf16.msra.mxu0 %v1353_v18 }
 0x52a   : > { %1312 = vmatprep.subr.bf16.mxu0 %v1389_v8 }
 0x58c   : > { %v720_v42 = vpop.f32.mrb[8].mxu1 }
 0x58d   : > { %v1282_v43 = vpop.f32.mrb[9].mxu1 }
 0x58e   : > { %v723_v44 = vpop.f32.mrb[10].mxu1 }
 0x58f   : > { %v1283_v45 = vpop.f32.mrb[11].mxu1 }
 0x5f3   : > { %v768_v48 = vpop.f32.mrb[12].mxu0 }
 0x5f4   : > { %871 = vrot.lane.b32.xlu0 %v768_v48, %s1397_s12  ;;  %v1288_v49 = vpop.f32.mrb[13].mxu0 }
 0x5f5   : > { %v771_v50 = vpop.f32.mrb[14].mxu0  ;;  %v816_v51 = vpop.f32.mrb[12].mxu1 }
 0x5f6   : > { %875 = vrot.lane.b32.xlu1 %v816_v51, %s1398_s13  ;;  %v1289_v52 = vpop.f32.mrb[15].mxu0  ;;  %v1294_v53 = vpop.f32.mrb[13].mxu1 }
 0x5f7   : > { %v819_v54 = vpop.f32.mrb[14].mxu1 }
 0x5f8   : > { %v1295_v55 = vpop.f32.mrb[15].mxu1 }
 0x5fb   : > { %v864_v56 = vpop.f32.mrb[16].mxu0 }
 0x5fc   : > { %879 = vrot.lane.b32.xlu0 %v864_v56, %s1399_s14  ;;  %v1300_v57 = vpop.f32.mrb[17].mxu0 }
 0x5fd   : > { %v867_v58 = vpop.f32.mrb[18].mxu0 }
 0x5fe   : > { %v1301_v59 = vpop.f32.mrb[19].mxu0 }
 0x666   : > { %v872_v60 = vpop.permute.xlu0 %871 }
 0x667   : > { %v882_v61 = vsel %vm430_vm3, %v720_v42, %v872_v60 }
 0x668   : > { %v876_v62 = vpop.permute.xlu1 %875 }
 0x669   : > { %v884_v63 = vsel %vm883_vm8, %v882_v61, %v876_v62 }
 0x66e   : > { %v880_v1 = vpop.permute.xlu0 %879 }
 0x66f   : > { %v886_v2 = vsel %vm885_vm9, %v884_v63, %v880_v1 }
 0x670   : > { %v887_v3 = vpack.c.bf16 %v886_v2, %v886_v2 }
 0x672   : > { %1307 = vmatmul.mubr.msk.bf16.vlgmr.msra.gmra.mrb[16].mxu1 %vm369_vm2, %v887_v3 }
 0x673   : > { %1326 = vmatprep.mubr.msk.bf16.mxu1 %vm1390_vm1, %v1389_v8  ;;  %1319 = vmatpush3.bf16.msra.mxu1 %v1355_v26 }
 0x674   : > { %1320 = vmatprep.subr.bf16.mxu1 %v1389_v8 }
 0x677   : > { %1321 = vmatpush3.bf16.msra.mxu1 %v1356_v27 }
 0x678   : > { %1322 = vmatprep.subr.bf16.mxu1 %v1389_v8 }
 0x67b   : > { %1323 = vmatpush3.bf16.msra.mxu1 %v1357_v28 }
 0x67c   : > { %1324 = vmatprep.subr.bf16.mxu1 %v1389_v8 }
 0x67f   : > { %1325 = vmatpush3.bf16.msra.mxu1 %v1358_v29 }
 0x745   : > { %v941_v4 = vpop.f32.mrb[16].mxu1 }
 0x746   : > { %v947_v6 = vadd.f32 %v941_v4, %v1466_v0  ;;  %v1308_v7 = vpop.f32.mrb[17].mxu1  ;;  %v1354_v0 = vld [vmem:[%s1616_s5 + $0x8] sm:$0xff]  }
 0x747   : > { %v944_v9 = vpop.f32.mrb[18].mxu1  ;;  %1313 = vmatpush3.bf16.msra.mxu0 %v1354_v0 }
 0x748   : > { %v955_v10 = vadd.f32 %v1203_v5, %v947_v6  ;;  %v1309_v11 = vpop.f32.mrb[19].mxu1 }
 0x74a   : > { %v956_v12 = vsel %vm330_vm0, %v955_v10, 0.0 }
 0x74b   : > { %957 = vadd.xlane.f32.xlu1 %v956_v12 }
 0x7d8   : > { %v958_v13 = vpop.xlane.xlu1 %957 }
 0x7d9   : > { %v959_v14 = vmul.f32 0.03125, %v958_v13 }
 0x7db   : > { %v960_v15 = vsub.f32 %v955_v10, %v959_v14 }
 0x7dd   : > { %v961_v16 = vmul.f32 %v960_v15, %v960_v15 }
 0x7df   : > { %v962_v17 = vsel %vm330_vm0, %v961_v16, 0.0 }
 0x7e0   : > { %963 = vadd.xlane.f32.xlu0 %v962_v17 }
 0x86d   : > { %v964_v19 = vpop.xlane.xlu0 %963 }
 0x86e   : > { %v965_v20 = vmul.f32 0.03125, %v964_v19 }
 0x870   : > { %v966_v21 = vadd.f32 1e-06, %v965_v20 }
 0x872   : > { %1377 = vrsqrt.f32 %v966_v21 }
 0x87c   : > { %v1378_v22 = vpop.eup %1377 }
 0x87d   : > { %v968_v23 = vmul.f32 %v1378_v22, %v960_v15 }
 0x87f   : > { %v969_v25 = vpack.c.bf16 %v968_v23, %v968_v23 }
 0x881   : > { %1315 = vmatmul.mubr.msk.bf16.vlgmr.msra.gmra.mrb[20].mxu0 %vm369_vm2, %v969_v25 }
 0x954   : > { %v1030_v30 = vpop.f32.mrb[20].mxu0 }
 0x955   : > { %v1031_v31 = vadd.f32 %v1204_v24, %v1030_v30  ;;  %v1316_v32 = vpop.f32.mrb[21].mxu0 }
 0x956   : > { %v1033_v33 = vpop.f32.mrb[22].mxu0 }
 0x957   : > { %v1037_v34 = vmul.f32 0.70710677, %v1031_v31  ;;  %v1317_v35 = vpop.f32.mrb[23].mxu0  ;;  %v1036_v37 = vmul.f32 0.5, %v1031_v31 }
 0x959   : > { %1379 = verf.f32 %v1037_v34 }
 0x963   : > { %v1380_v36 = vpop.eup %1379 }
 0x964   : > { %v1039_v8 = vadd.f32 1.0, %v1380_v36 }
 0x966   : > { %v1040_v38 = vmul.f32 %v1039_v8, %v1036_v37 }
 0x968   : > { %v1041_v39 = vpack.c.bf16 %v1040_v38, %v1040_v38 }
 0x96a   : > { %1327 = vmatmul.mubr.msk.bf16.vlgmr.msra.gmra.mrb[20].mxu1 %vm1074_vm10, %v1041_v39 }
 0xa3d   : > { %v1112_v40 = vpop.f32.mrb[20].mxu1 }
 0xa3e   : > { %v1118_v42 = vadd.f32 %v1112_v40, %v955_v10  ;;  %v1328_v43 = vpop.f32.mrb[21].mxu1 }
 0xa3f   : > { %v1115_v44 = vpop.f32.mrb[22].mxu1 }
 0xa40   : > { %v1126_v45 = vadd.f32 %v1213_v41, %v1118_v42  ;;  %v1329_v46 = vpop.f32.mrb[23].mxu1 }
 0xa42   : > { %1127 = vst.msk [vmem:[%s327_s17] sm:$0x1f] %vm330_vm0, %v1126_v45 }
 0xa43 PF: > { %s19_s30 = sadd.s32 1, %s1387_s30  }
 0xa44   : > { %p16_p4 = scmp.ge.s32.totalorder %s19_s30, 4  }
 0xa46   :  { %18 = sbr.rel (!%p16_p4) target bundleno = 1 (0x1), region = 86 }

</bundles_post_ra>
